<compile_context>
chip_gen: v5e
topology: v5e:2x2
jax: 0.10.0
libtpu: 0.0.40
codegen_flags: <defaults>
</compile_context>

<pallas_src>
import jax
import jax.numpy as jnp
from jax.experimental import pallas as pl
from jax.experimental.pallas import tpu as pltpu

H1 = 400   # layer_1 / layer_4 width
H2 = 300   # layer_2 / layer_5 width


def _critic_kernel(obs_ref, u_ref,
                   w1o_ref, w1a_ref, b1_ref,
                   w2_ref, b2_ref, w5_ref, b5_ref,
                   w36_ref, b36_ref,
                   q_ref):
    obs = obs_ref[...].astype(jnp.bfloat16)
    u = u_ref[...].astype(jnp.bfloat16)

    # Fused layer_1 / layer_4 with the concat folded into split weights: [tm, 800]
    h = jnp.dot(obs, w1o_ref[...], preferred_element_type=jnp.float32)
    h = h + jnp.dot(u, w1a_ref[...], preferred_element_type=jnp.float32)
    h = jnp.maximum(h + b1_ref[...], 0.0).astype(jnp.bfloat16)

    # layer_2 / layer_5 on the two 400-wide halves.
    g1 = jnp.dot(h[:, :H1], w2_ref[...], preferred_element_type=jnp.float32)
    g1 = jnp.maximum(g1 + b2_ref[...], 0.0).astype(jnp.bfloat16)
    g2 = jnp.dot(h[:, H1:], w5_ref[...], preferred_element_type=jnp.float32)
    g2 = jnp.maximum(g2 + b5_ref[...], 0.0).astype(jnp.bfloat16)

    # layer_3 / layer_6 as one block-diagonal [600, 2] dot -> lane-dense [tm, 2].
    g = jnp.concatenate([g1, g2], axis=1)
    q = jnp.dot(g, w36_ref[...], preferred_element_type=jnp.float32) + b36_ref[...]
    q_ref[...] = q.astype(q_ref.dtype)


def pack_params(params, state_dim):
    """Convert per-layer [in, out] f32 params into the fused bf16 kernel layout."""
    (w1, b1, w2, b2, w3, b3, w4, b4, w5, b5, w6, b6) = params
    w14 = jnp.concatenate([w1, w4], axis=1)                 # [d_in, 800]
    w1o = w14[:state_dim].astype(jnp.bfloat16)              # [state_dim, 800]
    w1a = w14[state_dim:].astype(jnp.bfloat16)              # [action_dim, 800]
    b14 = jnp.concatenate([b1, b4], axis=1)                 # [1, 800] f32
    w36 = jnp.zeros((2 * H2, 2), jnp.float32)
    w36 = w36.at[:H2, 0:1].set(w3).at[H2:, 1:2].set(w6)     # block-diag [600, 2]
    b36 = jnp.concatenate([b3, b6], axis=1)                 # [1, 2] f32
    return (w1o, w1a, b14,
            w2.astype(jnp.bfloat16), b2,
            w5.astype(jnp.bfloat16), b5,
            w36.astype(jnp.bfloat16), b36)


def _pick_tile_m(batch):
    for t in (512, 256, 128, 64, 32, 16, 8):
        if batch % t == 0:
            return t
    return batch   # small/odd batches: single block equal to the full batch dim


def cnn_critic_forward(obs, u, packed):
    """CNNCritic_target.forward(obs, u) -> (q1, q2), each [B, 1] float32."""
    B, state_dim = obs.shape
    action_dim = u.shape[1]
    tm = _pick_tile_m(B)
    grid = (B // tm,)

    (w1o, w1a, b14, w2, b2, w5, b5, w36, b36) = packed

    def batch_spec(feat):
        return pl.BlockSpec((tm, feat), lambda i: (i, 0))

    def resident_spec(shape):
        # Weights/biases: same block on every grid step -> stay VMEM-resident.
        return pl.BlockSpec(shape, lambda i: (0, 0))

    in_specs = [
        batch_spec(state_dim),
        batch_spec(action_dim),
        resident_spec(w1o.shape), resident_spec(w1a.shape), resident_spec(b14.shape),
        resident_spec(w2.shape), resident_spec(b2.shape),
        resident_spec(w5.shape), resident_spec(b5.shape),
        resident_spec(w36.shape), resident_spec(b36.shape),
    ]

    q = pl.pallas_call(
        _critic_kernel,
        out_shape=jax.ShapeDtypeStruct((B, 2), jnp.float32),
        grid=grid,
        in_specs=in_specs,
        out_specs=pl.BlockSpec((tm, 2), lambda i: (i, 0)),
        compiler_params=pltpu.CompilerParams(
            dimension_semantics=("parallel",)),
    )(obs, u, w1o, w1a, b14, w2, b2, w5, b5, w36, b36)

    return q[:, 0:1], q[:, 1:2]


def init_params(key, state_dim, action_dim):
    """Deterministic PyTorch-Linear-style init; weights stored [in, out], f32."""
    d_in = state_dim + action_dim
    dims = [(d_in, H1), (H1, H2), (H2, 1),   # layer_1..3
            (d_in, H1), (H1, H2), (H2, 1)]   # layer_4..6
    params = []
    for (fan_in, fan_out) in dims:
        key, kw, kb = jax.random.split(key, 3)
        bound = 1.0 / jnp.sqrt(fan_in)
        w = jax.random.uniform(kw, (fan_in, fan_out), jnp.float32, -bound, bound)
        b = jax.random.uniform(kb, (1, fan_out), jnp.float32, -bound, bound)
        params.extend([w, b])
    return tuple(params)


def reference_forward(obs, u, params):
    """Pure-f32 JAX equivalent of the PyTorch forward()."""
    (w1, b1, w2, b2, w3, b3, w4, b4, w5, b5, w6, b6) = params
    xu = jnp.concatenate([obs, u], axis=1)
    x1 = jax.nn.relu(xu @ w1 + b1)
    x1 = jax.nn.relu(x1 @ w2 + b2)
    x1 = x1 @ w3 + b3
    x2 = jax.nn.relu(xu @ w4 + b4)
    x2 = jax.nn.relu(x2 @ w5 + b5)
    x2 = x2 @ w6 + b6
    return x1, x2


def reference_forward_packed(obs, u, packed):
    """Plain-JAX replica of the exact bf16 kernel math (tight comparison)."""
    (w1o, w1a, b14, w2, b2, w5, b5, w36, b36) = packed
    obs_b = obs.astype(jnp.bfloat16)
    u_b = u.astype(jnp.bfloat16)
    h = jnp.dot(obs_b, w1o, preferred_element_type=jnp.float32)
    h = h + jnp.dot(u_b, w1a, preferred_element_type=jnp.float32)
    h = jnp.maximum(h + b14, 0.0).astype(jnp.bfloat16)
    g1 = jnp.dot(h[:, :H1], w2, preferred_element_type=jnp.float32)
    g1 = jnp.maximum(g1 + b2, 0.0).astype(jnp.bfloat16)
    g2 = jnp.dot(h[:, H1:], w5, preferred_element_type=jnp.float32)
    g2 = jnp.maximum(g2 + b5, 0.0).astype(jnp.bfloat16)
    g = jnp.concatenate([g1, g2], axis=1)
    q = jnp.dot(g, w36, preferred_element_type=jnp.float32) + b36
    return q[:, 0:1], q[:, 1:2]


if __name__ == "__main__":
    key = jax.random.PRNGKey(0)
    batch, state_dim, action_dim = 8, 32, 8

    key, k_obs, k_u, k_p = jax.random.split(key, 4)
    obs = jax.random.normal(k_obs, (batch, state_dim), jnp.float32)
    u = jax.random.normal(k_u, (batch, action_dim), jnp.float32)
    params = init_params(k_p, state_dim, action_dim)
    packed = pack_params(params, state_dim)

    q1, q2 = cnn_critic_forward(obs, u, packed)
    q1 = jax.block_until_ready(q1)
    q2 = jax.block_until_ready(q2)
    assert q1.shape == (batch, 1) and q2.shape == (batch, 1)

    # Tight check against a bf16-matched JAX reference (same math as the kernel).
    r1, r2 = reference_forward_packed(obs, u, packed)
    assert jnp.allclose(q1, r1, atol=1e-3, rtol=1e-3)
    assert jnp.allclose(q2, r2, atol=1e-3, rtol=1e-3)

    # Loose sanity check against the pure-f32 PyTorch-equivalent reference
    # (difference is only the bf16 weight/activation quantization).
    f1, f2 = reference_forward(obs, u, params)
    assert jnp.allclose(q1, f1, atol=5e-2, rtol=5e-2)
    assert jnp.allclose(q2, f2, atol=5e-2, rtol=5e-2)

    print("KERNEL_OK")
</pallas_src>

<mosaic_0001>
module attributes {stable_mosaic.version = 11 : i64} {
  func.func @_critic_kernel(%arg0: i32, %arg1: memref<8x32xf32, #tpu.memory_space<vmem>>, %arg2: memref<8x8xf32, #tpu.memory_space<vmem>>, %arg3: memref<32x800xbf16, #tpu.memory_space<vmem>>, %arg4: memref<8x800xbf16, #tpu.memory_space<vmem>>, %arg5: memref<1x800xf32, #tpu.memory_space<vmem>>, %arg6: memref<400x300xbf16, #tpu.memory_space<vmem>>, %arg7: memref<1x300xf32, #tpu.memory_space<vmem>>, %arg8: memref<400x300xbf16, #tpu.memory_space<vmem>>, %arg9: memref<1x300xf32, #tpu.memory_space<vmem>>, %arg10: memref<600x2xbf16, #tpu.memory_space<vmem>>, %arg11: memref<1x2xf32, #tpu.memory_space<vmem>>, %arg12: memref<8x2xf32, #tpu.memory_space<vmem>>) attributes {dimension_semantics = [#tpu.dimension_semantics<parallel>], iteration_bounds = array<i64: 1>, scalar_prefetch = 0 : i64, scratch_operands = 0 : i64, tpu.core_type = #tpu.core_type<tc>, window_params = [{transform_indices = @transform_0, window_bounds = array<i64: 8, 32>}, {transform_indices = @transform_1, window_bounds = array<i64: 8, 8>}, {pipeline_mode = #tpu.pipeline_mode<synchronous>, transform_indices = @transform_2, window_bounds = array<i64: 32, 800>}, {pipeline_mode = #tpu.pipeline_mode<synchronous>, transform_indices = @transform_3, window_bounds = array<i64: 8, 800>}, {pipeline_mode = #tpu.pipeline_mode<synchronous>, transform_indices = @transform_4, window_bounds = array<i64: 1, 800>}, {pipeline_mode = #tpu.pipeline_mode<synchronous>, transform_indices = @transform_5, window_bounds = array<i64: 400, 300>}, {pipeline_mode = #tpu.pipeline_mode<synchronous>, transform_indices = @transform_6, window_bounds = array<i64: 1, 300>}, {pipeline_mode = #tpu.pipeline_mode<synchronous>, transform_indices = @transform_7, window_bounds = array<i64: 400, 300>}, {pipeline_mode = #tpu.pipeline_mode<synchronous>, transform_indices = @transform_8, window_bounds = array<i64: 1, 300>}, {pipeline_mode = #tpu.pipeline_mode<synchronous>, transform_indices = @transform_9, window_bounds = array<i64: 600, 2>}, {pipeline_mode = #tpu.pipeline_mode<synchronous>, transform_indices = @transform_10, window_bounds = array<i64: 1, 2>}, {transform_indices = @transform_11, window_bounds = array<i64: 8, 2>}]} {
    %c0 = arith.constant 0 : index
    %c0_0 = arith.constant 0 : index
    %0 = vector.load %arg1[%c0, %c0_0] : memref<8x32xf32, #tpu.memory_space<vmem>>, vector<8x32xf32>
    %1 = arith.truncf %0 : vector<8x32xf32> to vector<8x32xbf16>
    %c0_1 = arith.constant 0 : index
    %c0_2 = arith.constant 0 : index
    %2 = vector.load %arg2[%c0_1, %c0_2] : memref<8x8xf32, #tpu.memory_space<vmem>>, vector<8x8xf32>
    %3 = arith.truncf %2 : vector<8x8xf32> to vector<8x8xbf16>
    %c0_3 = arith.constant 0 : index
    %c0_4 = arith.constant 0 : index
    %4 = vector.load %arg3[%c0_3, %c0_4] : memref<32x800xbf16, #tpu.memory_space<vmem>>, vector<32x800xbf16>
    %cst = arith.constant dense<0.000000e+00> : vector<8x800xf32>
    %5 = tpu.matmul %1, %4, %cst {dimension_numbers = #tpu.dot_dimension_numbers<[1], [0], [0], [1], [0, 0, 1, 1], [], []>} : vector<8x32xbf16>, vector<32x800xbf16>, vector<8x800xf32> -> vector<8x800xf32>
    %c0_5 = arith.constant 0 : index
    %c0_6 = arith.constant 0 : index
    %6 = vector.load %arg4[%c0_5, %c0_6] : memref<8x800xbf16, #tpu.memory_space<vmem>>, vector<8x800xbf16>
    %cst_7 = arith.constant dense<0.000000e+00> : vector<8x800xf32>
    %7 = tpu.matmul %3, %6, %cst_7 {dimension_numbers = #tpu.dot_dimension_numbers<[1], [0], [0], [1], [0, 0, 1, 1], [], []>} : vector<8x8xbf16>, vector<8x800xbf16>, vector<8x800xf32> -> vector<8x800xf32>
    %8 = arith.addf %5, %7 : vector<8x800xf32>
    %c0_8 = arith.constant 0 : index
    %c0_9 = arith.constant 0 : index
    %9 = vector.load %arg5[%c0_8, %c0_9] : memref<1x800xf32, #tpu.memory_space<vmem>>, vector<1x800xf32>
    %10 = vector.broadcast %9 : vector<1x800xf32> to vector<8x800xf32>
    %11 = arith.addf %8, %10 : vector<8x800xf32>
    %cst_10 = arith.constant 0.000000e+00 : f32
    %12 = vector.broadcast %cst_10 : f32 to vector<8x800xf32>
    %13 = arith.maximumf %11, %12 : vector<8x800xf32>
    %14 = arith.truncf %13 : vector<8x800xf32> to vector<8x800xbf16>
    %15 = vector.extract_strided_slice %14 {offsets = [0, 0], sizes = [8, 400], strides = [1, 1]} : vector<8x800xbf16> to vector<8x400xbf16>
    %c0_11 = arith.constant 0 : index
    %c0_12 = arith.constant 0 : index
    %16 = vector.load %arg6[%c0_11, %c0_12] : memref<400x300xbf16, #tpu.memory_space<vmem>>, vector<400x300xbf16>
    %cst_13 = arith.constant dense<0.000000e+00> : vector<8x300xf32>
    %17 = tpu.matmul %15, %16, %cst_13 {dimension_numbers = #tpu.dot_dimension_numbers<[1], [0], [0], [1], [0, 0, 1, 1], [], []>} : vector<8x400xbf16>, vector<400x300xbf16>, vector<8x300xf32> -> vector<8x300xf32>
    %c0_14 = arith.constant 0 : index
    %c0_15 = arith.constant 0 : index
    %18 = vector.load %arg7[%c0_14, %c0_15] : memref<1x300xf32, #tpu.memory_space<vmem>>, vector<1x300xf32>
    %19 = vector.broadcast %18 : vector<1x300xf32> to vector<8x300xf32>
    %20 = arith.addf %17, %19 : vector<8x300xf32>
    %cst_16 = arith.constant 0.000000e+00 : f32
    %21 = vector.broadcast %cst_16 : f32 to vector<8x300xf32>
    %22 = arith.maximumf %20, %21 : vector<8x300xf32>
    %23 = arith.truncf %22 : vector<8x300xf32> to vector<8x300xbf16>
    %24 = vector.extract_strided_slice %14 {offsets = [0, 400], sizes = [8, 400], strides = [1, 1]} : vector<8x800xbf16> to vector<8x400xbf16>
    %c0_17 = arith.constant 0 : index
    %c0_18 = arith.constant 0 : index
    %25 = vector.load %arg8[%c0_17, %c0_18] : memref<400x300xbf16, #tpu.memory_space<vmem>>, vector<400x300xbf16>
    %cst_19 = arith.constant dense<0.000000e+00> : vector<8x300xf32>
    %26 = tpu.matmul %24, %25, %cst_19 {dimension_numbers = #tpu.dot_dimension_numbers<[1], [0], [0], [1], [0, 0, 1, 1], [], []>} : vector<8x400xbf16>, vector<400x300xbf16>, vector<8x300xf32> -> vector<8x300xf32>
    %c0_20 = arith.constant 0 : index
    %c0_21 = arith.constant 0 : index
    %27 = vector.load %arg9[%c0_20, %c0_21] : memref<1x300xf32, #tpu.memory_space<vmem>>, vector<1x300xf32>
    %28 = vector.broadcast %27 : vector<1x300xf32> to vector<8x300xf32>
    %29 = arith.addf %26, %28 : vector<8x300xf32>
    %cst_22 = arith.constant 0.000000e+00 : f32
    %30 = vector.broadcast %cst_22 : f32 to vector<8x300xf32>
    %31 = arith.maximumf %29, %30 : vector<8x300xf32>
    %32 = arith.truncf %31 : vector<8x300xf32> to vector<8x300xbf16>
    %33 = tpu.concatenate %23, %32 in 1 : vector<8x300xbf16>, vector<8x300xbf16> -> vector<8x600xbf16>
    %c0_23 = arith.constant 0 : index
    %c0_24 = arith.constant 0 : index
    %34 = vector.load %arg10[%c0_23, %c0_24] : memref<600x2xbf16, #tpu.memory_space<vmem>>, vector<600x2xbf16>
    %cst_25 = arith.constant dense<0.000000e+00> : vector<8x2xf32>
    %35 = tpu.matmul %33, %34, %cst_25 {dimension_numbers = #tpu.dot_dimension_numbers<[1], [0], [0], [1], [0, 0, 1, 1], [], []>} : vector<8x600xbf16>, vector<600x2xbf16>, vector<8x2xf32> -> vector<8x2xf32>
    %c0_26 = arith.constant 0 : index
    %c0_27 = arith.constant 0 : index
    %36 = vector.load %arg11[%c0_26, %c0_27] : memref<1x2xf32, #tpu.memory_space<vmem>>, vector<1x2xf32>
    %37 = vector.broadcast %36 : vector<1x2xf32> to vector<8x2xf32>
    %38 = arith.addf %35, %37 : vector<8x2xf32>
    %c0_28 = arith.constant 0 : index
    %c0_29 = arith.constant 0 : index
    %39 = vector.load %arg12[%c0_28, %c0_29] : memref<8x2xf32, #tpu.memory_space<vmem>>, vector<8x2xf32>
    tpu.vector_store %arg12[%c0_28, %c0_29], %38 {strides = array<i32>} : memref<8x2xf32, #tpu.memory_space<vmem>>, vector<8x2xf32>,
    return
  }
  func.func @transform_0(%arg0: i32) -> (i32, i32) {
    %c0_i32 = arith.constant 0 : i32
    %c0_i32_0 = arith.constant 0 : i32
    return %arg0, %c0_i32 : i32, i32
  }
  func.func @transform_1(%arg0: i32) -> (i32, i32) {
    %c0_i32 = arith.constant 0 : i32
    %c0_i32_0 = arith.constant 0 : i32
    return %arg0, %c0_i32 : i32, i32
  }
  func.func @transform_2(%arg0: i32) -> (i32, i32) {
    %c0_i32 = arith.constant 0 : i32
    %c0_i32_0 = arith.constant 0 : i32
    %c0_i32_1 = arith.constant 0 : i32
    return %c0_i32, %c0_i32_0 : i32, i32
  }
  func.func @transform_3(%arg0: i32) -> (i32, i32) {
    %c0_i32 = arith.constant 0 : i32
    %c0_i32_0 = arith.constant 0 : i32
    %c0_i32_1 = arith.constant 0 : i32
    return %c0_i32, %c0_i32_0 : i32, i32
  }
  func.func @transform_4(%arg0: i32) -> (i32, i32) {
    %c0_i32 = arith.constant 0 : i32
    %c0_i32_0 = arith.constant 0 : i32
    %c0_i32_1 = arith.constant 0 : i32
    return %c0_i32, %c0_i32_0 : i32, i32
  }
  func.func @transform_5(%arg0: i32) -> (i32, i32) {
    %c0_i32 = arith.constant 0 : i32
    %c0_i32_0 = arith.constant 0 : i32
    %c0_i32_1 = arith.constant 0 : i32
    return %c0_i32, %c0_i32_0 : i32, i32
  }
  func.func @transform_6(%arg0: i32) -> (i32, i32) {
    %c0_i32 = arith.constant 0 : i32
    %c0_i32_0 = arith.constant 0 : i32
    %c0_i32_1 = arith.constant 0 : i32
    return %c0_i32, %c0_i32_0 : i32, i32
  }
  func.func @transform_7(%arg0: i32) -> (i32, i32) {
    %c0_i32 = arith.constant 0 : i32
    %c0_i32_0 = arith.constant 0 : i32
    %c0_i32_1 = arith.constant 0 : i32
    return %c0_i32, %c0_i32_0 : i32, i32
  }
  func.func @transform_8(%arg0: i32) -> (i32, i32) {
    %c0_i32 = arith.constant 0 : i32
    %c0_i32_0 = arith.constant 0 : i32
    %c0_i32_1 = arith.constant 0 : i32
    return %c0_i32, %c0_i32_0 : i32, i32
  }
  func.func @transform_9(%arg0: i32) -> (i32, i32) {
    %c0_i32 = arith.constant 0 : i32
    %c0_i32_0 = arith.constant 0 : i32
    %c0_i32_1 = arith.constant 0 : i32
    return %c0_i32, %c0_i32_0 : i32, i32
  }
  func.func @transform_10(%arg0: i32) -> (i32, i32) {
    %c0_i32 = arith.constant 0 : i32
    %c0_i32_0 = arith.constant 0 : i32
    %c0_i32_1 = arith.constant 0 : i32
    return %c0_i32, %c0_i32_0 : i32, i32
  }
  func.func @transform_11(%arg0: i32) -> (i32, i32) {
    %c0_i32 = arith.constant 0 : i32
    %c0_i32_0 = arith.constant 0 : i32
    return %arg0, %c0_i32 : i32, i32
  }
}

</mosaic_0001>

<bundles_post_ra>
// kernel: tpu_custom_call.1
= control target key start
LH: loop header
LB: loop body
LE: loop exit
PB: predicated region body
PF: predicated region fallthrough
CT: control target
= control target key end

     0   :  { %16 = vsyncpa [#allocation3], 0  ;;  %s3758_s0 = inlined_call_operand.vmem [shape: f32[8,32], index: 0, kind: input, shape index: {}]   ;;  %s3759_s1 = inlined_call_operand.vmem [shape: f32[8,8], index: 1, kind: input, shape index: {}]   ;;  %s3760_s2 = inlined_call_operand.vmem [shape: bf16[32,800], index: 2, kind: input, shape index: {}]   ;;  %s3761_s3 = inlined_call_operand.vmem [shape: bf16[8,800], index: 3, kind: input, shape index: {}]   ;;  %s3762_s4 = inlined_call_operand.vmem [shape: f32[1,800], index: 4, kind: input, shape index: {}]   ;;  %s3763_s5 = inlined_call_operand.hbm [shape: bf16[400,300], index: 5, kind: input, shape index: {}]   ;;  %s3764_s6 = inlined_call_operand.vmem [shape: f32[1,300], index: 6, kind: input, shape index: {}]   ;;  %s3765_s7 = inlined_call_operand.hbm [shape: bf16[400,300], index: 7, kind: input, shape index: {}]   ;;  %s3766_s8 = inlined_call_operand.vmem [shape: f32[1,300], index: 8, kind: input, shape index: {}]   ;;  %s3767_s9 = inlined_call_operand.vmem [shape: bf16[600,2], index: 9, kind: input, shape index: {}]   ;;  %s3768_s10 = inlined_call_operand.vmem [shape: f32[1,2], index: 10, kind: input, shape index: {}]   ;;  %s3769_s11 = inlined_call_operand.vmem [shape: f32[8,2], index: 11, kind: output, shape index: {}]  }
   0x1   :  { %s32_s19 = sshll.u32 %s3763_s5, 4  ;;  %s33_s19 = int_to_ptr.hbm [resolvable:$true] %s32_s19 }
   0x2   :  { %17 = vsyncpa [#allocation5], 0  ;;  %s3314_s20 = smov [#allocation2]   ;;  %s47_s24 = sshll.u32 %s3765_s7, 4  ;;  %s48_s24 = int_to_ptr.hbm [resolvable:$true] %s47_s24 }
   0x3   :  { %s34_s21 = sshll.u32 %s3314_s20, 4  ;;  %s3315_s25 = smov 192   ;;  %s35_s21 = int_to_ptr.vmem [resolvable:$true] %s34_s21 }
   0x4   :  { %s3316_s26 = smov 12   ;;  %s3317_s27 = smov [#allocation4]  }
   0x5   :  { %40 = dma.hbm_to_vmem [thread:$0]  %s33_s19, 9600, %s35_s21, [#allocation3], %s3315_s25, %s3315_s25, %s3316_s26  }
   0x6   :  { %s49_s28 = sshll.u32 %s3317_s27, 4  ;;  %s50_s28 = int_to_ptr.vmem [resolvable:$true] %s49_s28 }
   0x7   :  { %55 = dma.hbm_to_vmem [thread:$0]  %s48_s24, 9600, %s50_s28, [#allocation5], %s3315_s25, %s3315_s25, %s3316_s26  }
   0x8   :  { %3310 = dma.done.wait [#allocation3], 9600  }
   0x9   :  { %3311 = vsyncadd [#allocation3], 4294957696 }
   0xa   :  { %3312 = dma.done.wait [#allocation5], 9600  }
   0xb   :  { %3313 = vsyncadd [#allocation5], 4294957696  ;;  %v91_v0 = vld [vmem:[%s3761_s3] sm:$0xff]  ;;  %v92_v1 = vld [vmem:[%s3761_s3 + $0x8] sm:$0xff]  ;;  %vm117_vm0 = vcmask 1043456   ;;  %vm113_vm1 = vcmask 64512  }
   0xc   :  { %v93_v2 = vld [vmem:[%s3761_s3 + $0x10] sm:$0xff]  ;;  %v99_v3 = vunpack.c.l.b16 %v91_v0  ;;  %v101_v4 = vunpack.c.l.b16 %v92_v1  ;;  %v102_v5 = vunpack.c.h.b16 %v92_v1  ;;  %v73_v7 = vld [vmem:[%s3759_s1] sm:$0xff]  ;;  %v2266_v8 = vld [vmem:[%s3760_s2 + $0x38] sm:$0xf]  ;;  %v100_v12 = vunpack.c.h.b16 %v91_v0  ;;  %s3319_s22 = smov 44  }
   0xd   :  { %v103_v6 = vunpack.c.l.b16 %v93_v2  ;;  %v3064_v9 = vld [vmem:[%s3760_s2 + $0x50] sm:$0xf0]  ;;  %v104_v10 = vunpack.c.h.b16 %v93_v2  ;;  %v3404_v11 = vpack.c.bf16 %v73_v7, %v73_v7  ;;  %v94_v13 = vld [vmem:[%s3761_s3 + $0x18] sm:$0xf]  ;;  %v3061_v18 = vld [vmem:[%s3760_s2 + $0x3c] sm:$0xf] }
   0xe   :  { %v106_v14 = vpack.c.b16 %v99_v3, %v99_v3  ;;  %v108_v15 = vpack.c.b16 %v101_v4, %v101_v4  ;;  %v109_v16 = vpack.c.b16 %v102_v5, %v102_v5  ;;  %v2268_v19 = vld [vmem:[%s3760_s2 + $0x54] sm:$0xf0]  ;;  %v107_v21 = vpack.c.b16 %v100_v12, %v100_v12  ;;  %v2238_v24 = vld [vmem:[%s3760_s2] sm:$0xf]  ;;  %v3057_v25 = vld [vmem:[%s3760_s2 + $0x18] sm:$0xf0] }
   0xf   :  { %v110_v17 = vpack.c.b16 %v103_v6, %v103_v6  ;;  %v111_v20 = vpack.c.b16 %v104_v10, %v104_v10  ;;  %v2267_v22 = vor.u32 %v3064_v9, %v2266_v8  ;;  %v105_v23 = vunpack.c.l.b16 %v94_v13  ;;  %v3062_v26 = vld [vmem:[%s3760_s2 + $0x44] sm:$0xf]  ;;  %v2276_v31 = vld [vmem:[%s3760_s2 + $0x5c] sm:$0xf0]  ;;  %v2282_v34 = vld [vmem:[%s3760_s2 + $0x48] sm:$0xf] }
  0x10   :  { %v119_v27 = vsel %vm117_vm0, %v106_v14, 0  ;;  %v125_v28 = vsel %vm117_vm0, %v108_v15, 0  ;;  %v128_v29 = vsel %vm117_vm0, %v109_v16, 0  ;;  %v122_v32 = vsel %vm117_vm0, %v107_v21, 0  ;;  %v3066_v35 = vld [vmem:[%s3760_s2 + $0x60] sm:$0xf0] }
  0x11   :  { %v131_v30 = vsel %vm117_vm0, %v110_v17, 0  ;;  %146 = vmatpush.bf16.msra.mxu1 %v119_v27  ;;  %172 = vmatpush.bf16.msra.mxu2 %v125_v28  ;;  %v112_v33 = vpack.c.b16 %v105_v23, %v105_v23  ;;  %v2271_v36 = vor.u32 %v3061_v18, %v2268_v19  ;;  %v2239_v38 = vor.u32 %v3057_v25, %v2238_v24  ;;  %v3054_v39 = vld [vmem:[%s3760_s2 + $0x4] sm:$0xf]  ;;  %v2240_v40 = vld [vmem:[%s3760_s2 + $0x1c] sm:$0xf0] }
  0x12   :  { %185 = vmatpush.bf16.msra.mxu3 %v128_v29  ;;  %198 = vmatpush.bf16.msra.mxu0 %v131_v30  ;;  %v134_v41 = vsel %vm117_vm0, %v111_v20, 0  ;;  %v2279_v42 = vor.u32 %v3062_v26, %v2276_v31  ;;  %v2283_v43 = vor.u32 %v3066_v35, %v2282_v34  ;;  %v3063_v44 = vld [vmem:[%s3760_s2 + $0x4c] sm:$0xf]  ;;  %v2284_v45 = vld [vmem:[%s3760_s2 + $0x64] sm:$0xf0]  ;;  %v2243_v50 = vor.u32 %v3054_v39, %v2240_v40  ;;  %v71_v57 = vld [vmem:[%s3758_s0] sm:$0xff] }
  0x13   :  { %v137_v37 = vsel %vm117_vm0, %v112_v33, 0  ;;  %v3055_v46 = vld [vmem:[%s3760_s2 + $0xc] sm:$0xf]  ;;  %v2248_v47 = vld [vmem:[%s3760_s2 + $0x24] sm:$0xf0]  ;;  %v2287_v51 = vor.u32 %v3063_v44, %v2284_v45  ;;  %v72_v60 = vpack.c.bf16 %v71_v57, %v71_v57  ;;  %vm302_vm2 = vcmask 261120  }
  0x14   :  { %2229 = vmatmul.msk.bf16.vlgmr.msra.gmra.mxu1 %vm113_vm1, %v3404_v11  ;;  %2231 = vmatmul.msk.bf16.vlgmr.msra.gmra.mxu2 %vm113_vm1, %v3404_v11  ;;  %v2254_v48 = vld [vmem:[%s3760_s2 + $0x10] sm:$0xf]  ;;  %v3059_v49 = vld [vmem:[%s3760_s2 + $0x28] sm:$0xf0]  ;;  %v2251_v52 = vor.u32 %v3055_v46, %v2248_v47  ;;  %v3056_v54 = vld [vmem:[%s3760_s2 + $0x14] sm:$0xf] }
  0x15   :  { %159 = vmatpush.bf16.msrb.mxu1 %v122_v32  ;;  %2232 = vmatmul.msk.bf16.vlgmr.msra.gmra.mxu3 %vm113_vm1, %v3404_v11  ;;  %v2255_v53 = vor.u32 %v3059_v49, %v2254_v48  ;;  %v2256_v55 = vld [vmem:[%s3760_s2 + $0x2c] sm:$0xf0]  ;;  %v2274_v58 = vld [vmem:[%s3760_s2 + $0x40] sm:$0xf]  ;;  %v3065_v59 = vld [vmem:[%s3760_s2 + $0x58] sm:$0xf0] }
  0x16   :  { %312 = vmatpush.bf16.msrb.mxu3 %v2267_v22  ;;  %2233 = vmatmul.msk.bf16.vlgmr.msra.gmra.mxu0 %vm113_vm1, %v3404_v11  ;;  %v2259_v56 = vor.u32 %v3056_v54, %v2256_v55  ;;  %v2275_v61 = vor.u32 %v3065_v59, %v2274_v58  ;;  %v2246_v62 = vld [vmem:[%s3760_s2 + $0x8] sm:$0xf]  ;;  %v3058_v63 = vld [vmem:[%s3760_s2 + $0x20] sm:$0xf0]  ;;  %v2290_v1 = vld [vmem:[%s3760_s2 + $0x50] sm:$0xf] }
  0x17   :  { %325 = vmatpush.bf16.msrb.mxu0 %v2271_v36  ;;  %224 = vmatpush.bf16.msrb.mxu2 %v137_v37  ;;  %v2247_v0 = vor.u32 %v3058_v63, %v2246_v62  ;;  %v3067_v2 = vld [vmem:[%s3760_s2 + $0x68] sm:$0xf0]  ;;  %v2262_v4 = vld [vmem:[%s3760_s2 + $0x18] sm:$0xf]  ;;  %v3060_v5 = vld [vmem:[%s3760_s2 + $0x30] sm:$0xf0] }
  0x18   :  { %v2291_v3 = vor.u32 %v3067_v2, %v2290_v1  ;;  %v2385_v6 = vld [vmem:[#allocation2 + $0xa8] sm:$0xf]  ;;  %v3090_v7 = vld [vmem:[#allocation2 + $0xb0] sm:$0xf0]  ;;  %v2373_v8 = vld [vmem:[#allocation2 + $0x90] sm:$0xf]  ;;  %v2263_v12 = vor.u32 %v3060_v5, %v2262_v4 }
  0x19   :  { %211 = vmatpush.bf16.msra.mxu1 %v134_v41  ;;  %v2386_v9 = vor.u32 %v3090_v7, %v2385_v6  ;;  %v3087_v10 = vld [vmem:[#allocation2 + $0x98] sm:$0xf0]  ;;  %v2361_v14 = vld [vmem:[#allocation2 + $0x78] sm:$0xf]  ;;  %v3084_v15 = vld [vmem:[#allocation2 + $0x80] sm:$0xf0] }
  0x1a   :  { %313 = vmatpush.bf16.msrb.mxu3 %v2239_v38  ;;  %v2374_v13 = vor.u32 %v3087_v10, %v2373_v8  ;;  %v2349_v16 = vld [vmem:[#allocation2 + $0x60] sm:$0xf]  ;;  %v3081_v17 = vld [vmem:[#allocation2 + $0x68] sm:$0xf0]  ;;  %v2337_v19 = vld [vmem:[#allocation2 + $0x48] sm:$0xf] }
  0x1b   :  { %351 = vmatpush.bf16.msra.mxu2 %v2279_v42  ;;  %326 = vmatpush.bf16.msrb.mxu0 %v2243_v50  ;;  %v2350_v18 = vor.u32 %v3081_v17, %v2349_v16  ;;  %v3078_v20 = vld [vmem:[#allocation2 + $0x50] sm:$0xf0]  ;;  %v2325_v22 = vld [vmem:[#allocation2 + $0x30] sm:$0xf]  ;;  %v3075_v23 = vld [vmem:[#allocation2 + $0x38] sm:$0xf0] }
  0x1c   :  { %v2338_v21 = vor.u32 %v3078_v20, %v2337_v19  ;;  %v2326_v24 = vor.u32 %v3075_v23, %v2325_v22  ;;  %v2481_v25 = vld [vmem:[#allocation2 + $0x168] sm:$0xf]  ;;  %v3114_v26 = vld [vmem:[#allocation2 + $0x170] sm:$0xf0]  ;;  %v2313_v28 = vld [vmem:[#allocation2 + $0x18] sm:$0xf] }
  0x1d   :  { %v2482_v27 = vor.u32 %v3114_v26, %v2481_v25  ;;  %v3072_v29 = vld [vmem:[#allocation2 + $0x20] sm:$0xf0]  ;;  %v2469_v31 = vld [vmem:[#allocation2 + $0x150] sm:$0xf]  ;;  %v3111_v32 = vld [vmem:[#allocation2 + $0x158] sm:$0xf0] }
  0x1e   :  { %364 = vmatpush.bf16.msra.mxu3 %v2283_v43  ;;  %v2314_v30 = vor.u32 %v3072_v29, %v2313_v28  ;;  %v2470_v33 = vor.u32 %v3111_v32, %v2469_v31  ;;  %v2301_v34 = vld [vmem:[#allocation2] sm:$0xf]  ;;  %v3069_v35 = vld [vmem:[#allocation2 + $0x8] sm:$0xf0]  ;;  %v2483_v38 = vld [vmem:[#allocation2 + $0x174] sm:$0xf0] }
  0x1f   :  { %377 = vmatpush.bf16.msra.mxu0 %v2287_v51  ;;  %352 = vmatpush.bf16.msra.mxu2 %v2251_v52  ;;  %v2302_v36 = vor.u32 %v3069_v35, %v2301_v34  ;;  %v3113_v37 = vld [vmem:[#allocation2 + $0x16c] sm:$0xf]  ;;  %v2457_v40 = vld [vmem:[#allocation2 + $0x138] sm:$0xf]  ;;  %v3108_v41 = vld [vmem:[#allocation2 + $0x140] sm:$0xf0] }
  0x20   :  { %v2486_v39 = vor.u32 %v3113_v37, %v2483_v38  ;;  %v2458_v42 = vor.u32 %v3108_v41, %v2457_v40  ;;  %v3110_v43 = vld [vmem:[#allocation2 + $0x154] sm:$0xf]  ;;  %v2471_v44 = vld [vmem:[#allocation2 + $0x15c] sm:$0xf0]  ;;  %v3105_v47 = vld [vmem:[#allocation2 + $0x128] sm:$0xf0] }
  0x21   :  { %v2445_v45 = vld [vmem:[#allocation2 + $0x120] sm:$0xf]  ;;  %v2474_v46 = vor.u32 %v3110_v43, %v2471_v44  ;;  %v3107_v49 = vld [vmem:[#allocation2 + $0x13c] sm:$0xf]  ;;  %v2459_v50 = vld [vmem:[#allocation2 + $0x144] sm:$0xf0] }
  0x22   :  { %365 = vmatpush.bf16.msra.mxu3 %v2255_v53  ;;  %v2446_v48 = vor.u32 %v3105_v47, %v2445_v45  ;;  %v2462_v51 = vor.u32 %v3107_v49, %v2459_v50  ;;  %v2433_v52 = vld [vmem:[#allocation2 + $0x108] sm:$0xf]  ;;  %v3102_v53 = vld [vmem:[#allocation2 + $0x110] sm:$0xf0]  ;;  %v3104_v55 = vld [vmem:[#allocation2 + $0x124] sm:$0xf] }
  0x23   :  { %378 = vmatpush.bf16.msra.mxu0 %v2259_v56  ;;  %v2434_v54 = vor.u32 %v3102_v53, %v2433_v52  ;;  %v2447_v56 = vld [vmem:[#allocation2 + $0x12c] sm:$0xf0]  ;;  %v3099_v59 = vld [vmem:[#allocation2 + $0xf8] sm:$0xf0]  ;;  %v2435_v62 = vld [vmem:[#allocation2 + $0x114] sm:$0xf0] }
  0x24   :  { %2230 = vmatmul.msk.bf16.vlgmr.msrb.gmra.mxu1 %vm113_vm1, %v3404_v11  ;;  %2235 = vmatmul.msk.bf16.vlgmr.msrb.gmra.mxu2 %vm113_vm1, %v3404_v11  ;;  %v2450_v57 = vor.u32 %v3104_v55, %v2447_v56  ;;  %v2421_v58 = vld [vmem:[#allocation2 + $0xf0] sm:$0xf]  ;;  %v3096_v1 = vld [vmem:[#allocation2 + $0xe0] sm:$0xf0]  ;;  %v2423_v4 = vld [vmem:[#allocation2 + $0xfc] sm:$0xf0] }
  0x25   :  { %2292 = vmatmul.msk.bf16.vlgmr.msrb.gmra.mxu3 %vm302_vm2, %v72_v60  ;;  %338 = vmatpush.bf16.msrb.mxu1 %v2275_v61  ;;  %v3101_v61 = vld [vmem:[#allocation2 + $0x10c] sm:$0xf]  ;;  %v2397_v6 = vld [vmem:[#allocation2 + $0xc0] sm:$0xf]  ;;  %v3138_v10 = vld [vmem:[#allocation2 + $0x230] sm:$0xf0] }
  0x26   :  { %2293 = vmatmul.msk.bf16.vlgmr.msrb.gmra.mxu0 %vm302_vm2, %v72_v60  ;;  %956 = vmatpush.bf16.msrb.mxu2 %v2386_v9  ;;  %v2438_v63 = vor.u32 %v3101_v61, %v2435_v62  ;;  %v3093_v7 = vld [vmem:[#allocation2 + $0xc8] sm:$0xf0]  ;;  %v2577_v9 = vld [vmem:[#allocation2 + $0x228] sm:$0xf]  ;;  %v2387_v22 = vld [vmem:[#allocation2 + $0xb4] sm:$0xf0] }
  0x27   :  { %969 = vmatpush.bf16.msrb.mxu3 %v2482_v27  ;;  %v2398_v8 = vor.u32 %v3093_v7, %v2397_v6  ;;  %v3141_v19 = vld [vmem:[#allocation2 + $0x248] sm:$0xf0]  ;;  %v2565_v25 = vld [vmem:[#allocation2 + $0x210] sm:$0xf]  ;;  %v3135_v26 = vld [vmem:[#allocation2 + $0x218] sm:$0xf0] }
  0x28   :  { %v3134_v27 = vld [vmem:[#allocation2 + $0x214] sm:$0xf]  ;;  %v2566_v29 = vor.u32 %v3135_v26, %v2565_v25  ;;  %v3092_v31 = vld [vmem:[#allocation2 + $0xc4] sm:$0xf]  ;;  %v2399_v32 = vld [vmem:[#allocation2 + $0xcc] sm:$0xf0] }
  0x29   :  { %339 = vmatpush.bf16.msrb.mxu1 %v2247_v0  ;;  %v2409_v0 = vld [vmem:[#allocation2 + $0xd8] sm:$0xf]  ;;  %v2402_v34 = vor.u32 %v3092_v31, %v2399_v32  ;;  %v3086_v35 = vld [vmem:[#allocation2 + $0x94] sm:$0xf]  ;;  %v3131_v40 = vld [vmem:[#allocation2 + $0x1fc] sm:$0xf] }
  0x2a   :  { %957 = vmatpush.bf16.msrb.mxu2 %v2374_v13  ;;  %v2410_v2 = vor.u32 %v3096_v1, %v2409_v0  ;;  %v2578_v13 = vor.u32 %v3138_v10, %v2577_v9  ;;  %v2553_v38 = vld [vmem:[#allocation2 + $0x1f8] sm:$0xf]  ;;  %v2363_v47 = vld [vmem:[#allocation2 + $0x84] sm:$0xf0]  ;;  %v2541_v50 = vld [vmem:[#allocation2 + $0x1e0] sm:$0xf] }
  0x2b   :  { %970 = vmatpush.bf16.msrb.mxu3 %v2470_v33  ;;  %v2543_v55 = vld [vmem:[#allocation2 + $0x1ec] sm:$0xf0]  ;;  %v3126_v61 = vld [vmem:[#allocation2 + $0x1d0] sm:$0xf0]  ;;  %v3125_v62 = vld [vmem:[#allocation2 + $0x1cc] sm:$0xf] }
  0x2c   :  { %982 = vmatpush.bf16.msrb.mxu0 %v2578_v13  ;;  %v2531_v0 = vld [vmem:[#allocation2 + $0x1d4] sm:$0xf0]  ;;  %v2517_v9 = vld [vmem:[#allocation2 + $0x1b0] sm:$0xf]  ;;  %v3123_v10 = vld [vmem:[#allocation2 + $0x1b8] sm:$0xf0] }
  0x2d   :  { %v2339_v6 = vld [vmem:[#allocation2 + $0x54] sm:$0xf0]  ;;  %v2507_v26 = vld [vmem:[#allocation2 + $0x1a4] sm:$0xf0]  ;;  %v3071_v32 = vld [vmem:[#allocation2 + $0x1c] sm:$0xf] }
  0x2e   :  { %vm952_vm3 = vcmask 130048   ;;  %vm1241_vm4 = vcmask 916480   ;;  %vm1836_vm5 = vcmask 359424   ;;  %vm2149_vm6 = vcmask 719872  }
  0x2f   :  { %971 = vmatpush.bf16.msrb.mxu3 %v2458_v42  ;;  %v2555_v42 = vld [vmem:[#allocation2 + $0x204] sm:$0xf0]  ;;  %vm2221_vm7 = vcmask 15360  }
  0x30   :  { %983 = vmatpush.bf16.msrb.mxu0 %v2566_v29  ;;  %v2558_v44 = vor.u32 %v3131_v40, %v2555_v42  ;;  %v3116_v40 = vld [vmem:[#allocation2 + $0x184] sm:$0xf] }
  0x33   :  { %972 = vmatpush.bf16.msrb.mxu3 %v2446_v48 }
  0x34   :  { %2234 = vmatmul.msk.bf16.vlgmr.msra.gmra.mxu1 %vm113_vm1, %v3404_v11  ;;  %2295 = vmatmul.msk.bf16.vlgmr.msra.gmra.mxu2 %vm302_vm2, %v72_v60  ;;  %v2362_v11 = vor.u32 %v3084_v15, %v2361_v14  ;;  %v2579_v14 = vld [vmem:[#allocation2 + $0x234] sm:$0xf0]  ;;  %v3095_v15 = vld [vmem:[#allocation2 + $0xdc] sm:$0xf] }
  0x35   :  { %2296 = vmatmul.msk.bf16.vlgmr.msra.gmra.mxu3 %vm302_vm2, %v72_v60  ;;  %390 = vmatpush.bf16.msra.mxu1 %v2291_v3  ;;  %v3098_v3 = vld [vmem:[#allocation2 + $0xf4] sm:$0xf] }
  0x36   :  { %2297 = vmatmul.msk.bf16.vlgmr.msra.gmra.mxu0 %vm302_vm2, %v72_v60  ;;  %958 = vmatpush.bf16.msrb.mxu2 %v2362_v11  ;;  %v2426_v5 = vor.u32 %v3098_v3, %v2423_v4  ;;  %v2411_v11 = vld [vmem:[#allocation2 + $0xe4] sm:$0xf0]  ;;  %v3529_v4 = vld [vmem:[%s3762_s4] sm:$0x7f]  ;;  %s3318_s4 = smov 112  }
  0x37   :  { %973 = vmatpush.bf16.msrb.mxu3 %v2434_v54  ;;  %v2414_v17 = vor.u32 %v3095_v15, %v2411_v11  ;;  %v3128_v54 = vld [vmem:[#allocation2 + $0x1e4] sm:$0xf]  ;;  %v2519_v15 = vld [vmem:[#allocation2 + $0x1bc] sm:$0xf0]  ;;  %v399_v29 = vperm.slane %v3529_v4, 0 }
  0x38   :  { %v2546_v56 = vor.u32 %v3128_v54, %v2543_v55 }
  0x39   :  { %391 = vmatpush.bf16.msra.mxu1 %v2263_v12  ;;  %v3137_v12 = vld [vmem:[#allocation2 + $0x22c] sm:$0xf] }
  0x3a   :  { %959 = vmatpush.bf16.msrb.mxu2 %v2350_v18  ;;  %v2582_v16 = vor.u32 %v3137_v12, %v2579_v14  ;;  %v2589_v18 = vld [vmem:[#allocation2 + $0x240] sm:$0xf]  ;;  %v3122_v12 = vld [vmem:[#allocation2 + $0x1b4] sm:$0xf]  ;;  %v2518_v14 = vor.u32 %v3123_v10, %v2517_v9  ;;  %v403_v10 = vperm.slane %v3529_v4, 4 }
  0x3b   :  { %v2590_v20 = vor.u32 %v3141_v19, %v2589_v18  ;;  %v2522_v11 = vor.u32 %v3122_v12, %v2519_v15  ;;  %v2327_v18 = vld [vmem:[#allocation2 + $0x3c] sm:$0xf0] }
  0x3c   :  { %v2561_v12 = vld [vmem:[#allocation2 + $0x200] sm:$0xf] }
  0x3e   :  { %960 = vmatpush.bf16.msrb.mxu2 %v2338_v21  ;;  %v3089_v21 = vld [vmem:[#allocation2 + $0xac] sm:$0xf] }
  0x42   :  { %961 = vmatpush.bf16.msrb.mxu2 %v2326_v24  ;;  %v2390_v24 = vor.u32 %v3089_v21, %v2387_v22  ;;  %v2505_v21 = vld [vmem:[#allocation2 + $0x198] sm:$0xf]  ;;  %v3120_v22 = vld [vmem:[#allocation2 + $0x1a0] sm:$0xf0] }
  0x43   :  { %v2506_v25 = vor.u32 %v3120_v22, %v2505_v21  ;;  %v2549_v22 = vld [vmem:[#allocation2 + $0x1e8] sm:$0xf] }
  0x44   :  { %2294 = vmatmul.msk.bf16.vlgmr.msrb.gmra.mxu1 %vm302_vm2, %v72_v60 }
  0x45   :  { %1002 = vmatpush.bf16.msrb.mxu1 %v2590_v20 }
  0x46   :  { %962 = vmatpush.bf16.msrb.mxu2 %v2314_v30  ;;  %v2567_v30 = vld [vmem:[#allocation2 + $0x21c] sm:$0xf0] }
  0x47   :  { %v2570_v33 = vor.u32 %v3134_v27, %v2567_v30 }
  0x4a   :  { %963 = vmatpush.bf16.msrb.mxu2 %v2302_v36  ;;  %v2375_v36 = vld [vmem:[#allocation2 + $0x9c] sm:$0xf0] }
  0x4b   :  { %v2378_v37 = vor.u32 %v3086_v35, %v2375_v36 }
  0x4e   :  { %1021 = vmatpush.bf16.msra.mxu2 %v2486_v39  ;;  %v3132_v39 = vld [vmem:[#allocation2 + $0x200] sm:$0xf0] }
  0x4f   :  { %v2554_v41 = vor.u32 %v3132_v39, %v2553_v38  ;;  %v2493_v38 = vld [vmem:[#allocation2 + $0x180] sm:$0xf]  ;;  %v3117_v39 = vld [vmem:[#allocation2 + $0x188] sm:$0xf0] }
  0x50   :  { %v2494_v42 = vor.u32 %v3117_v39, %v2493_v38 }
  0x51   :  { %984 = vmatpush.bf16.msrb.mxu0 %v2554_v41 }
  0x52   :  { %1022 = vmatpush.bf16.msra.mxu2 %v2474_v46  ;;  %v3083_v46 = vld [vmem:[#allocation2 + $0x7c] sm:$0xf] }
  0x53   :  { %v2366_v49 = vor.u32 %v3083_v46, %v2363_v47 }
  0x54   :  { %2298 = vmatmul.msk.bf16.vlgmr.msra.gmra.mxu1 %vm302_vm2, %v72_v60  ;;  %v2422_v60 = vor.u32 %v3099_v59, %v2421_v58  ;;  %v2351_v58 = vld [vmem:[#allocation2 + $0x6c] sm:$0xf0] }
  0x55   :  { %1008 = vmatpush.bf16.msra.mxu1 %v2390_v24  ;;  %v3119_v24 = vld [vmem:[#allocation2 + $0x19c] sm:$0xf] }
  0x56   :  { %1023 = vmatpush.bf16.msra.mxu2 %v2462_v51  ;;  %974 = vmatpush.bf16.msrb.mxu3 %v2422_v60  ;;  %v3129_v51 = vld [vmem:[#allocation2 + $0x1e8] sm:$0xf0]  ;;  %v2529_v60 = vld [vmem:[#allocation2 + $0x1c8] sm:$0xf]  ;;  %v2510_v30 = vor.u32 %v3119_v24, %v2507_v26  ;;  %v3130_v24 = vld [vmem:[#allocation2 + $0x1f0] sm:$0xf0] }
  0x57   :  { %v2542_v53 = vor.u32 %v3129_v51, %v2541_v50  ;;  %v3140_v50 = vld [vmem:[#allocation2 + $0x244] sm:$0xf] }
  0x59   :  { %1009 = vmatpush.bf16.msra.mxu1 %v2378_v37  ;;  %985 = vmatpush.bf16.msrb.mxu0 %v2542_v53  ;;  %v2591_v53 = vld [vmem:[#allocation2 + $0x24c] sm:$0xf0] }
  0x5a   :  { %1024 = vmatpush.bf16.msra.mxu2 %v2450_v57  ;;  %975 = vmatpush.bf16.msrb.mxu3 %v2410_v2  ;;  %v3080_v57 = vld [vmem:[#allocation2 + $0x64] sm:$0xf]  ;;  %v2534_v2 = vor.u32 %v3125_v62, %v2531_v0  ;;  %v2594_v54 = vor.u32 %v3140_v50, %v2591_v53 }
  0x5b   :  { %v2354_v59 = vor.u32 %v3080_v57, %v2351_v58  ;;  %v2585_v57 = vld [vmem:[#allocation2 + $0x230] sm:$0xf]  ;;  %v3139_v58 = vld [vmem:[#allocation2 + $0x238] sm:$0xf0] }
  0x5c   :  { %v2586_v0 = vor.u32 %v3139_v58, %v2585_v57  ;;  %v3115_v57 = vld [vmem:[#allocation2 + $0x178] sm:$0xf0] }
  0x5d   :  { %1010 = vmatpush.bf16.msra.mxu1 %v2366_v49  ;;  %v2303_v49 = vld [vmem:[#allocation2 + $0xc] sm:$0xf0] }
  0x5e   :  { %1025 = vmatpush.bf16.msra.mxu2 %v2438_v63  ;;  %976 = vmatpush.bf16.msrb.mxu3 %v2398_v8  ;;  %v2530_v63 = vor.u32 %v3126_v61, %v2529_v60 }
  0x60   :  { %986 = vmatpush.bf16.msrb.mxu0 %v2530_v63 }
  0x61   :  { %1011 = vmatpush.bf16.msra.mxu1 %v2354_v59 }
  0x62   :  { %1026 = vmatpush.bf16.msra.mxu2 %v2426_v5  ;;  %1034 = vmatpush.bf16.msra.mxu3 %v2582_v16  ;;  %v3077_v5 = vld [vmem:[#allocation2 + $0x4c] sm:$0xf]  ;;  %v400_v16 = vperm.slane %v3529_v4, 1 }
  0x63   :  { %v2342_v8 = vor.u32 %v3077_v5, %v2339_v6  ;;  %v3136_v5 = vld [vmem:[#allocation2 + $0x220] sm:$0xf0] }
  0x64   :  { %987 = vmatpush.bf16.msrb.mxu0 %v2518_v14 }
  0x65   :  { %1012 = vmatpush.bf16.msra.mxu1 %v2342_v8 }
  0x66   :  { %1027 = vmatpush.bf16.msra.mxu2 %v2414_v17  ;;  %1035 = vmatpush.bf16.msra.mxu3 %v2570_v33  ;;  %v3074_v17 = vld [vmem:[#allocation2 + $0x34] sm:$0xf]  ;;  %v2315_v33 = vld [vmem:[#allocation2 + $0x24] sm:$0xf0] }
  0x67   :  { %v2330_v20 = vor.u32 %v3074_v17, %v2327_v18  ;;  %v2318_v37 = vor.u32 %v3071_v32, %v2315_v33  ;;  %v2550_v32 = vor.u32 %v3130_v24, %v2549_v22  ;;  %v2537_v33 = vld [vmem:[#allocation2 + $0x1d0] sm:$0xf] }
  0x68   :  { %988 = vmatpush.bf16.msrb.mxu0 %v2506_v25 }
  0x69   :  { %1013 = vmatpush.bf16.msra.mxu1 %v2330_v20  ;;  %v3142_v20 = vld [vmem:[#allocation2 + $0x250] sm:$0xf0] }
  0x6a   :  { %1028 = vmatpush.bf16.msra.mxu2 %v2402_v34  ;;  %1036 = vmatpush.bf16.msra.mxu3 %v2558_v44  ;;  %v2495_v44 = vld [vmem:[#allocation2 + $0x18c] sm:$0xf0] }
  0x6b   :  { %v2498_v47 = vor.u32 %v3116_v40, %v2495_v44 }
  0x6c   :  { %989 = vmatpush.bf16.msrb.mxu0 %v2494_v42 }
  0x6d   :  { %1014 = vmatpush.bf16.msra.mxu1 %v2318_v37 }
  0x6e   :  { %1037 = vmatpush.bf16.msra.mxu3 %v2546_v56 }
  0x70   :  { %1054 = vmatpush.bf16.msra.mxu0 %v2594_v54 }
  0x72   :  { %1038 = vmatpush.bf16.msra.mxu3 %v2534_v2 }
  0x76   :  { %1039 = vmatpush.bf16.msra.mxu3 %v2522_v11 }
  0x7a   :  { %1040 = vmatpush.bf16.msra.mxu3 %v2510_v30 }
  0x7e   :  { %1041 = vmatpush.bf16.msra.mxu3 %v2498_v47 }
  0x91   :  { %v3518_v23 = vpop.f32.mrf.mxu1 }
  0x93   :  { %v3520_v28 = vpop.f32.mrf.mxu0 }
  0x97   :  { %v3522_v43 = vpop.f32.mrf.mxu2 }
  0x98   :  { %v3524_v45 = vpop.f32.mrf.mxu3 }
  0x99   :  { %v150_v48 = vpop.f32.mrf.mxu1 }
  0x9a   :  { %v3068_v48 = vld [vmem:[#allocation2 + $0x4] sm:$0xf] }
  0x9b   :  { %v202_v52 = vpop.f32.mrf.mxu0 }
  0x9f   :  { %v176_v1 = vpop.f32.mrf.mxu2 }
  0xa0   :  { %v189_v3 = vpop.f32.mrf.mxu3 }
  0xa1   :  { %v161_v7 = vpop.f32.mrf.mxu1  ;;  %v2573_v3 = vld [vmem:[#allocation2 + $0x218] sm:$0xf] }
  0xa2   :  { %v2574_v8 = vor.u32 %v3136_v5, %v2573_v3 }
  0xa3   :  { %v328_v13 = vpop.f32.mrf.mxu0 }
  0xa4   :  { %v329_v19 = vadd.f32 %v328_v13, %v161_v7  ;;  %v404_v7 = vperm.slane %v3529_v4, 5  ;;  %v3133_v13 = vld [vmem:[#allocation2 + $0x208] sm:$0xf0] }
  0xa5   :  { %v2562_v17 = vor.u32 %v3133_v13, %v2561_v12  ;;  %v405_v13 = vperm.slane %v3529_v4, 6 }
  0xa6   :  { %v414_v34 = vadd.f32 %v400_v16, %v329_v19  ;;  %v2597_v19 = vld [vmem:[#allocation2 + $0x248] sm:$0xf] }
  0xa7   :  { %v3532_v27 = vpop.f32.mrf.mxu2  ;;  %v2598_v25 = vor.u32 %v3142_v20, %v2597_v19  ;;  %v3109_v19 = vld [vmem:[#allocation2 + $0x148] sm:$0xf0] }
  0xa8   :  { %v315_v31 = vpop.f32.mrf.mxu3  ;;  %v421_v51 = vmax.f32 %v414_v34, 0.0  ;;  %v3127_v34 = vld [vmem:[#allocation2 + $0x1d8] sm:$0xf0] }
  0xa9   :  { %v316_v35 = vadd.f32 %v315_v31, %v3518_v23  ;;  %v163_v36 = vpop.f32.mrf.mxu1  ;;  %v2306_v23 = vor.u32 %v3068_v48, %v2303_v49  ;;  %v402_v31 = vperm.slane %v3529_v4, 3  ;;  %v2538_v42 = vor.u32 %v3127_v34, %v2537_v33 }
  0xaa   :  { %v401_v36 = vperm.slane %v3529_v4, 2  ;;  %v3106_v4 = vld [vmem:[#allocation2 + $0x130] sm:$0xf0] }
  0xab   :  { %v330_v41 = vpop.f32.mrf.mxu0  ;;  %v413_v46 = vadd.f32 %v399_v29, %v316_v35  ;;  %1015 = vmatpush.bf16.msra.mxu1 %v2306_v23  ;;  %v3121_v23 = vld [vmem:[#allocation2 + $0x1a8] sm:$0xf0] }
  0xad   :  { %v420_v52 = vmax.f32 %v413_v46, 0.0  ;;  %v3124_v46 = vld [vmem:[#allocation2 + $0x1c0] sm:$0xf0] }
  0xaf   :  { %v427_v55 = vpack.c.bf16 %v421_v51, %v420_v52  ;;  %v228_v56 = vpop.f32.mrf.mxu2  ;;  %v2513_v52 = vld [vmem:[#allocation2 + $0x1a0] sm:$0xf] }
  0xb0   :  { %v317_v59 = vpop.f32.mrf.mxu3  ;;  %v2489_v56 = vld [vmem:[#allocation2 + $0x170] sm:$0xf] }
  0xb1   :  { %v541_v60 = vunpack.c.l.b16 %v427_v55  ;;  %v542_v61 = vunpack.c.h.b16 %v427_v55  ;;  %v213_v62 = vpop.f32.mrf.mxu1  ;;  %v3091_v55 = vld [vmem:[#allocation2 + $0xb8] sm:$0xf0] }
  0xb3   :  { %v380_v63 = vpop.f32.mrf.mxu0  ;;  %v3536_v1 = vpack.c.b16 %v541_v60, %v541_v60  ;;  %v3538_v2 = vpack.c.b16 %v542_v61, %v542_v61  ;;  %v2514_v60 = vor.u32 %v3121_v23, %v2513_v52  ;;  %v2664_v52 = vld [vmem:[#allocation4 + $0x78] sm:$0xf]  ;;  %v3159_v23 = vld [vmem:[#allocation4 + $0x80] sm:$0xf0] }
  0xb4   :  { %v381_v6 = vadd.f32 %v380_v63, %v213_v62  ;;  %v2501_v62 = vld [vmem:[#allocation2 + $0x188] sm:$0xf]  ;;  %v3118_v63 = vld [vmem:[#allocation2 + $0x190] sm:$0xf0] }
  0xb5   :  { %964 = vmatmul.bf16.vlgmr.msrb.gmra.mxu2 %v3536_v1  ;;  %977 = vmatmul.bf16.vlgmr.msrb.gmra.mxu3 %v3538_v2  ;;  %v2502_v12 = vor.u32 %v3118_v63, %v2501_v62 }
  0xb6   :  { %1086 = vmatpush.bf16.msrb.mxu2 %v2586_v0  ;;  %v418_v15 = vadd.f32 %v404_v7, %v381_v6  ;;  %1106 = vmatpush.bf16.msrb.mxu3 %v2598_v25  ;;  %v2490_v6 = vor.u32 %v3115_v57, %v2489_v56  ;;  %v2381_v7 = vld [vmem:[#allocation2 + $0x98] sm:$0xf]  ;;  %v2357_v25 = vld [vmem:[#allocation2 + $0x68] sm:$0xf]  ;;  %v3073_v56 = vld [vmem:[#allocation2 + $0x28] sm:$0xf0] }
  0xb7   :  { %v354_v9 = vpop.f32.mrf.mxu2  ;;  %v2417_v57 = vld [vmem:[#allocation2 + $0xe0] sm:$0xf] }
  0xb8   :  { %v367_v14 = vpop.f32.mrf.mxu3  ;;  %v425_v26 = vmax.f32 %v418_v15, 0.0  ;;  %v355_v30 = vadd.f32 %v354_v9, %v3524_v45  ;;  %v2525_v45 = vld [vmem:[#allocation2 + $0x1b8] sm:$0xf] }
  0xb9   :  { %v368_v11 = vadd.f32 %v367_v14, %v3520_v28  ;;  %v215_v16 = vpop.f32.mrf.mxu1  ;;  %v2526_v50 = vor.u32 %v3124_v46, %v2525_v45  ;;  %v2477_v9 = vld [vmem:[#allocation2 + $0x158] sm:$0xf] }
  0xba   :  { %1087 = vmatpush.bf16.msrb.mxu2 %v2574_v8  ;;  %v416_v40 = vadd.f32 %v402_v31, %v355_v30  ;;  %v3088_v8 = vld [vmem:[#allocation2 + $0xa0] sm:$0xf0]  ;;  %v2688_v30 = vld [vmem:[#allocation4 + $0xa8] sm:$0xf]  ;;  %v3165_v31 = vld [vmem:[#allocation4 + $0xb0] sm:$0xf0] }
  0xbb   :  { %v382_v18 = vpop.f32.mrf.mxu0  ;;  %v417_v21 = vadd.f32 %v403_v10, %v368_v11  ;;  %v3112_v10 = vld [vmem:[#allocation2 + $0x160] sm:$0xf0]  ;;  %v2382_v14 = vor.u32 %v3088_v8, %v2381_v7  ;;  %v2369_v11 = vld [vmem:[#allocation2 + $0x80] sm:$0xf]  ;;  %v3094_v7 = vld [vmem:[#allocation2 + $0xd0] sm:$0xf0] }
  0xbc   :  { %v423_v48 = vmax.f32 %v416_v40, 0.0  ;;  %v2478_v15 = vor.u32 %v3112_v10, %v2477_v9  ;;  %v2465_v18 = vld [vmem:[#allocation2 + $0x140] sm:$0xf]  ;;  %v2676_v40 = vld [vmem:[#allocation4 + $0x90] sm:$0xf] }
  0xbd   :  { %v424_v29 = vmax.f32 %v417_v21, 0.0  ;;  %v2466_v24 = vor.u32 %v3109_v19, %v2465_v18  ;;  %v2640_v8 = vld [vmem:[#allocation4 + $0x48] sm:$0xf]  ;;  %v3153_v9 = vld [vmem:[#allocation4 + $0x50] sm:$0xf0] }
  0xbe   :  { %1088 = vmatpush.bf16.msrb.mxu2 %v2562_v17  ;;  %v3085_v17 = vld [vmem:[#allocation2 + $0x88] sm:$0xf0]  ;;  %v2784_v10 = vld [vmem:[#allocation4 + $0x168] sm:$0xf]  ;;  %v3186_v19 = vld [vmem:[#allocation4 + $0x158] sm:$0xf0] }
  0xbf   :  { %v429_v28 = vpack.c.bf16 %v425_v26, %v424_v29  ;;  %v356_v35 = vpop.f32.mrf.mxu2  ;;  %v2370_v22 = vor.u32 %v3085_v17, %v2369_v11  ;;  %v3082_v26 = vld [vmem:[#allocation2 + $0x70] sm:$0xf0]  ;;  %v2453_v29 = vld [vmem:[#allocation2 + $0x128] sm:$0xf]  ;;  %v2880_v17 = vld [vmem:[#allocation4 + $0x228] sm:$0xf] }
  0xc0   :  { %v369_v37 = vpop.f32.mrf.mxu3  ;;  %v2358_v33 = vor.u32 %v3082_v26, %v2357_v25  ;;  %v2454_v34 = vor.u32 %v3106_v4, %v2453_v29  ;;  %v2345_v35 = vld [vmem:[#allocation2 + $0x50] sm:$0xf]  ;;  %v3213_v18 = vld [vmem:[#allocation4 + $0x230] sm:$0xf0]  ;;  %v2628_v25 = vld [vmem:[#allocation4 + $0x30] sm:$0xf] }
  0xc1   :  { %v341_v38 = vpop.f32.mrf.mxu1  ;;  %v1227_v39 = vunpack.c.l.b16 %v429_v28  ;;  %v1228_v51 = vunpack.c.h.b16 %v429_v28  ;;  %v2689_v28 = vor.u32 %v3165_v31, %v2688_v30  ;;  %v2441_v37 = vld [vmem:[#allocation2 + $0x110] sm:$0xf]  ;;  %v3150_v26 = vld [vmem:[#allocation4 + $0x38] sm:$0xf0] }
  0xc2   :  { %v342_v41 = vadd.f32 %v341_v38, %v3522_v43  ;;  %1089 = vmatpush.bf16.msrb.mxu2 %v2550_v32  ;;  %v2393_v43 = vld [vmem:[#allocation2 + $0xb0] sm:$0xf]  ;;  %v2629_v29 = vor.u32 %v3150_v26, %v2628_v25  ;;  %v2832_v25 = vld [vmem:[#allocation4 + $0x1c8] sm:$0xf]  ;;  %v3201_v26 = vld [vmem:[#allocation4 + $0x1d0] sm:$0xf0] }
  0xc3   :  { %v1230_v44 = vpack.c.b16 %v1227_v39, %v1227_v39  ;;  %v1231_v61 = vpack.c.b16 %v1228_v51, %v1228_v51  ;;  %v2394_v5 = vor.u32 %v3091_v55, %v2393_v43  ;;  %v3103_v39 = vld [vmem:[#allocation2 + $0x118] sm:$0xf0]  ;;  %v3100_v51 = vld [vmem:[#allocation2 + $0x100] sm:$0xf0]  ;;  %v2321_v55 = vld [vmem:[#allocation2 + $0x20] sm:$0xf] }
  0xc4   :  { %v415_v47 = vadd.f32 %v401_v36, %v342_v41  ;;  %v3079_v36 = vld [vmem:[#allocation2 + $0x58] sm:$0xf0]  ;;  %v3162_v41 = vld [vmem:[#allocation4 + $0x98] sm:$0xf0]  ;;  %v2322_v62 = vor.u32 %v3073_v56, %v2321_v55  ;;  %v2690_v4 = vld [vmem:[#allocation4 + $0xb4] sm:$0xf0] }
  0xc5   :  { %1235 = vrot.lane.b32.xlu1 %v1230_v44, %s3318_s4  ;;  %1029 = vmatmul.bf16.vlgmr.msra.gmra.mxu2 %v3538_v2  ;;  %v2677_v44 = vor.u32 %v3162_v41, %v2676_v40  ;;  %v2346_v46 = vor.u32 %v3079_v36, %v2345_v35  ;;  %v2736_v36 = vld [vmem:[#allocation4 + $0x108] sm:$0xf]  ;;  %v3174_v40 = vld [vmem:[#allocation4 + $0xf8] sm:$0xf0]  ;;  %v3147_v55 = vld [vmem:[#allocation4 + $0x20] sm:$0xf0] }
  0xc6   :  { %v422_v49 = vmax.f32 %v415_v47, 0.0  ;;  %1090 = vmatpush.bf16.msrb.mxu2 %v2538_v42  ;;  %v2442_v47 = vor.u32 %v3103_v39, %v2441_v37  ;;  %v3177_v37 = vld [vmem:[#allocation4 + $0x110] sm:$0xf0]  ;;  %v2724_v39 = vld [vmem:[#allocation4 + $0xf0] sm:$0xf] }
  0xc7   :  { %v2725_v41 = vor.u32 %v3174_v40, %v2724_v39 }
  0xc8   :  { %v428_v53 = vpack.c.bf16 %v423_v48, %v422_v49  ;;  %v2333_v48 = vld [vmem:[#allocation2 + $0x38] sm:$0xf]  ;;  %v3076_v49 = vld [vmem:[#allocation2 + $0x40] sm:$0xf0] }
  0xc9   :  { %v343_v54 = vpop.f32.mrf.mxu1  ;;  %v2334_v43 = vor.u32 %v3076_v49, %v2333_v48 }
  0xca   :  { %v543_v58 = vunpack.c.l.b16 %v428_v53  ;;  %v544_v59 = vunpack.c.h.b16 %v428_v53  ;;  %1091 = vmatpush.bf16.msrb.mxu2 %v2526_v50  ;;  %v2429_v50 = vld [vmem:[#allocation2 + $0xf8] sm:$0xf]  ;;  %v2665_v53 = vor.u32 %v3159_v23, %v2664_v52  ;;  %v3209_v23 = vld [vmem:[#allocation4 + $0x214] sm:$0xf] }
  0xcb   :  { %v2430_v54 = vor.u32 %v3100_v51, %v2429_v50  ;;  %v2868_v50 = vld [vmem:[#allocation4 + $0x210] sm:$0xf]  ;;  %v3210_v51 = vld [vmem:[#allocation4 + $0x218] sm:$0xf0] }
  0xcc   :  { %v3551_v0 = vpack.c.b16 %v544_v59, %v544_v59  ;;  %v547_v3 = vpack.c.b16 %v543_v58, %v543_v58  ;;  %v3097_v58 = vld [vmem:[#allocation2 + $0xe8] sm:$0xf0]  ;;  %v2652_v59 = vld [vmem:[#allocation4 + $0x60] sm:$0xf]  ;;  %v2869_v52 = vor.u32 %v3210_v51, %v2868_v50  ;;  %v2750_v50 = vld [vmem:[#allocation4 + $0x12c] sm:$0xf0] }
  0xcd   :  { %1237 = vrot.lane.b32.xlu1 %v1231_v61, %s3318_s4  ;;  %v2418_v63 = vor.u32 %v3097_v58, %v2417_v57  ;;  %v3161_v57 = vld [vmem:[#allocation4 + $0x94] sm:$0xf]  ;;  %v2678_v58 = vld [vmem:[#allocation4 + $0x9c] sm:$0xf0]  ;;  %v3194_v51 = vld [vmem:[#allocation4 + $0x19c] sm:$0xf] }
  0xce   :  { %1092 = vmatpush.bf16.msrb.mxu2 %v2514_v60  ;;  %990 = vmatmul.bf16.vlgmr.msrb.gmra.mxu0 %v547_v3  ;;  %v3156_v60 = vld [vmem:[#allocation4 + $0x68] sm:$0xf0] }
  0xcf   :  { %2599 = vmatmul.msk.bf16.vlgmr.msrb.gmra.mxu1 %vm952_vm3, %v3551_v0  ;;  %1042 = vmatmul.bf16.vlgmr.msra.gmra.mxu3 %v547_v3  ;;  %v2653_v61 = vor.u32 %v3156_v60, %v2652_v59  ;;  %v2856_v59 = vld [vmem:[#allocation4 + $0x1f8] sm:$0xf]  ;;  %v2681_v60 = vor.u32 %v3161_v57, %v2678_v58  ;;  %v3192_v57 = vld [vmem:[#allocation4 + $0x188] sm:$0xf0] }
  0xd0   :  { %1060 = vmatpush.bf16.msrb.mxu0 %v2394_v5  ;;  %1073 = vmatpush.bf16.msrb.mxu1 %v2490_v6  ;;  %v3070_v5 = vld [vmem:[#allocation2 + $0x10] sm:$0xf0]  ;;  %v2405_v6 = vld [vmem:[#allocation2 + $0xc8] sm:$0xf]  ;;  %v3176_v58 = vld [vmem:[#allocation4 + $0x10c] sm:$0xf] }
  0xd1   :  { %v393_v16 = vpop.f32.mrf.mxu1  ;;  %1651 = vmatpush.bf16.msra.mxu3 %v2689_v28  ;;  %v3183_v28 = vld [vmem:[#allocation4 + $0x140] sm:$0xf0] }
  0xd2   :  { %v394_v20 = vadd.f32 %v393_v16, %v3532_v27  ;;  %1093 = vmatpush.bf16.msrb.mxu2 %v2502_v12  ;;  %v3189_v12 = vld [vmem:[#allocation4 + $0x170] sm:$0xf0]  ;;  %v2772_v16 = vld [vmem:[#allocation4 + $0x150] sm:$0xf] }
  0xd3   :  { %v2785_v11 = vor.u32 %v3189_v12, %v2784_v10  ;;  %v2773_v30 = vor.u32 %v3186_v19, %v2772_v16  ;;  %v2666_v10 = vld [vmem:[#allocation4 + $0x84] sm:$0xf0]  ;;  %v2844_v12 = vld [vmem:[#allocation4 + $0x1e0] sm:$0xf]  ;;  %v2846_v19 = vld [vmem:[#allocation4 + $0x1ec] sm:$0xf0] }
  0xd4   :  { %v419_v21 = vadd.f32 %v405_v13, %v394_v20  ;;  %1061 = vmatpush.bf16.msrb.mxu0 %v2382_v14  ;;  %1074 = vmatpush.bf16.msrb.mxu1 %v2478_v15  ;;  %v2641_v13 = vor.u32 %v3153_v9, %v2640_v8  ;;  %v2406_v15 = vor.u32 %v3094_v7, %v2405_v6  ;;  %v2604_v6 = vld [vmem:[#allocation4] sm:$0xf]  ;;  %v3144_v7 = vld [vmem:[#allocation4 + $0x8] sm:$0xf0]  ;;  %v3158_v8 = vld [vmem:[#allocation4 + $0x7c] sm:$0xf] }
  0xd5   :  { %1094 = vmatmul.bf16.vlgmr.msrb.gmra.mxu2 %v547_v3  ;;  %1652 = vmatpush.bf16.msra.mxu3 %v2677_v44  ;;  %v2309_v3 = vld [vmem:[#allocation2 + $0x8] sm:$0xf]  ;;  %v2881_v20 = vor.u32 %v3213_v18, %v2880_v17  ;;  %v3171_v44 = vld [vmem:[#allocation4 + $0xe0] sm:$0xf0]  ;;  %v2605_v9 = vor.u32 %v3144_v7, %v2604_v6 }
  0xd6   :  { %v426_v32 = vmax.f32 %v419_v21, 0.0  ;;  %v2310_v14 = vor.u32 %v3070_v5, %v2309_v3  ;;  %v2892_v21 = vld [vmem:[#allocation4 + $0x240] sm:$0xf]  ;;  %v3203_v18 = vld [vmem:[#allocation4 + $0x1e4] sm:$0xf] }
  0xd7   :  { %v2606_v6 = vld [vmem:[#allocation4 + $0xc] sm:$0xf0]  ;;  %v3215_v7 = vld [vmem:[#allocation4 + $0x244] sm:$0xf] }
  0xd8   :  { %1062 = vmatpush.bf16.msrb.mxu0 %v2370_v22  ;;  %1075 = vmatpush.bf16.msrb.mxu1 %v2466_v24  ;;  %v430_v27 = vpack.c.bf16 %v426_v32, %v426_v32  ;;  %v3216_v22 = vld [vmem:[#allocation4 + $0x248] sm:$0xf0]  ;;  %v2760_v32 = vld [vmem:[#allocation4 + $0x138] sm:$0xf] }
  0xd9   :  { %v395_v38 = vpop.f32.mrf.mxu1  ;;  %1653 = vmatpush.bf16.msra.mxu3 %v2665_v53  ;;  %v2893_v24 = vor.u32 %v3216_v22, %v2892_v21  ;;  %v2870_v53 = vld [vmem:[#allocation4 + $0x21c] sm:$0xf0]  ;;  %v3155_v21 = vld [vmem:[#allocation4 + $0x64] sm:$0xf]  ;;  %v2654_v22 = vld [vmem:[#allocation4 + $0x6c] sm:$0xf0] }
  0xda   :  { %v1229_v42 = vunpack.c.l.b16 %v430_v27  ;;  %v3180_v27 = vld [vmem:[#allocation4 + $0x128] sm:$0xf0]  ;;  %v2737_v38 = vor.u32 %v3177_v37, %v2736_v36  ;;  %v3198_v36 = vld [vmem:[#allocation4 + $0x1b8] sm:$0xf0] }
  0xdb   :  { %1697 = vmatpush.bf16.msra.mxu2 %v2893_v24  ;;  %v2657_v24 = vor.u32 %v3155_v21, %v2654_v22  ;;  %v3182_v37 = vld [vmem:[#allocation4 + $0x13c] sm:$0xf]  ;;  %v2702_v21 = vld [vmem:[#allocation4 + $0xcc] sm:$0xf0] }
  0xdc   :  { %1063 = vmatpush.bf16.msrb.mxu0 %v2358_v33  ;;  %1076 = vmatpush.bf16.msrb.mxu1 %v2454_v34  ;;  %v1232_v45 = vpack.c.b16 %v1229_v42, %v1229_v42  ;;  %v2761_v33 = vor.u32 %v3183_v28, %v2760_v32  ;;  %v2748_v34 = vld [vmem:[#allocation4 + $0x120] sm:$0xf]  ;;  %v2712_v42 = vld [vmem:[#allocation4 + $0xd8] sm:$0xf] }
  0xdd   :  { %1654 = vmatpush.bf16.msra.mxu3 %v2653_v61  ;;  %v2749_v35 = vor.u32 %v3180_v27, %v2748_v34  ;;  %v3207_v61 = vld [vmem:[#allocation4 + $0x200] sm:$0xf0]  ;;  %v2642_v34 = vld [vmem:[#allocation4 + $0x54] sm:$0xf0]  ;;  %v2820_v27 = vld [vmem:[#allocation4 + $0x1b0] sm:$0xf] }
  0xde   :  { %1239 = vrot.lane.b32.xlu0 %v1232_v45, %s3318_s4  ;;  %2600 = vmatmul.msk.bf16.vlgmr.msra.gmra.mxu0 %vm952_vm3, %v3551_v0  ;;  %v3168_v45 = vld [vmem:[#allocation4 + $0xc8] sm:$0xf0]  ;;  %v2857_v3 = vor.u32 %v3207_v61, %v2856_v59  ;;  %v2821_v39 = vor.u32 %v3198_v36, %v2820_v27  ;;  %v3191_v61 = vld [vmem:[#allocation4 + $0x184] sm:$0xf]  ;;  %v2792_v27 = vld [vmem:[#allocation4 + $0x170] sm:$0xf] }
  0xdf   :  { %1016 = vmatmul.bf16.vlgmr.msra.gmra.mxu1 %v3536_v1  ;;  %2601 = vmatmul.msk.bf16.vlgmr.msrb.gmra.mxu3 %vm952_vm3, %v3551_v0 }
  0xe0   :  { %1064 = vmatpush.bf16.msrb.mxu0 %v2346_v46  ;;  %1077 = vmatpush.bf16.msrb.mxu1 %v2442_v47  ;;  %v3212_v46 = vld [vmem:[#allocation4 + $0x22c] sm:$0xf]  ;;  %v2882_v47 = vld [vmem:[#allocation4 + $0x234] sm:$0xf0] }
  0xe1   :  { %1655 = vmatpush.bf16.msra.mxu3 %v2641_v13  ;;  %v2885_v49 = vor.u32 %v3212_v46, %v2882_v47  ;;  %v2669_v13 = vor.u32 %v3158_v8, %v2666_v10  ;;  %v2808_v46 = vld [vmem:[#allocation4 + $0x198] sm:$0xf]  ;;  %v3195_v47 = vld [vmem:[#allocation4 + $0x1a0] sm:$0xf0]  ;;  %v3173_v10 = vld [vmem:[#allocation4 + $0xf4] sm:$0xf] }
  0xe4   :  { %1065 = vmatpush.bf16.msrb.mxu0 %v2334_v43  ;;  %1078 = vmatpush.bf16.msrb.mxu1 %v2430_v54  ;;  %v2873_v43 = vor.u32 %v3209_v23, %v2870_v53  ;;  %v2616_v54 = vld [vmem:[#allocation4 + $0x18] sm:$0xf] }
  0xe5   :  { %1656 = vmatpush.bf16.msra.mxu3 %v2629_v29  ;;  %v2617_v56 = vor.u32 %v3147_v55, %v2616_v54  ;;  %v2833_v29 = vor.u32 %v3201_v26, %v2832_v25  ;;  %v2618_v54 = vld [vmem:[#allocation4 + $0x24] sm:$0xf0]  ;;  %v3217_v25 = vld [vmem:[#allocation4 + $0x250] sm:$0xf0] }
  0xe6   :  { %1233 = vrot.lane.b32.xlu0 %v3551_v0, %s3318_s4  ;;  %v3164_v0 = vld [vmem:[#allocation4 + $0xac] sm:$0xf] }
  0xe7   :  { %v2693_v31 = vor.u32 %v3164_v0, %v2690_v4  ;;  %v3185_v0 = vld [vmem:[#allocation4 + $0x154] sm:$0xf]  ;;  %v2774_v4 = vld [vmem:[#allocation4 + $0x15c] sm:$0xf0] }
  0xe8   :  { %1066 = vmatpush.bf16.msrb.mxu0 %v2322_v62  ;;  %1079 = vmatpush.bf16.msrb.mxu1 %v2418_v63  ;;  %v3206_v62 = vld [vmem:[#allocation4 + $0x1fc] sm:$0xf]  ;;  %v2858_v63 = vld [vmem:[#allocation4 + $0x204] sm:$0xf0]  ;;  %v2777_v32 = vor.u32 %v3185_v0, %v2774_v4 }
  0xe9   :  { %1703 = vmatpush.bf16.msrb.mxu2 %v2693_v31  ;;  %1657 = vmatpush.bf16.msra.mxu3 %v2617_v56  ;;  %v2861_v5 = vor.u32 %v3206_v62, %v2858_v63  ;;  %v2834_v31 = vld [vmem:[#allocation4 + $0x1d4] sm:$0xf0]  ;;  %v2796_v56 = vld [vmem:[#allocation4 + $0x180] sm:$0xf]  ;;  %v2798_v62 = vld [vmem:[#allocation4 + $0x18c] sm:$0xf0] }
  0xea   :  { %v2797_v59 = vor.u32 %v3192_v57, %v2796_v56  ;;  %v3214_v56 = vld [vmem:[#allocation4 + $0x238] sm:$0xf0] }
  0xec   :  { %1067 = vmatpush.bf16.msrb.mxu0 %v2310_v14  ;;  %1080 = vmatpush.bf16.msrb.mxu1 %v2406_v15  ;;  %v3204_v14 = vld [vmem:[#allocation4 + $0x1e8] sm:$0xf0] }
  0xed   :  { %1704 = vmatpush.bf16.msrb.mxu2 %v2681_v60  ;;  %v3188_v15 = vld [vmem:[#allocation4 + $0x16c] sm:$0xf]  ;;  %1658 = vmatpush.bf16.msra.mxu3 %v2605_v9  ;;  %v2845_v16 = vor.u32 %v3204_v14, %v2844_v12  ;;  %v2738_v60 = vld [vmem:[#allocation4 + $0x114] sm:$0xf0]  ;;  %v2894_v9 = vld [vmem:[#allocation4 + $0x24c] sm:$0xf0] }
  0xee   :  { %v2741_v63 = vor.u32 %v3176_v58, %v2738_v60  ;;  %v2726_v12 = vld [vmem:[#allocation4 + $0xfc] sm:$0xf0]  ;;  %v2660_v60 = vld [vmem:[#allocation4 + $0x68] sm:$0xf] }
  0xef   :  { %1068 = vmatmul.bf16.vlgmr.msrb.gmra.mxu0 %v3536_v1  ;;  %1081 = vmatmul.bf16.vlgmr.msrb.gmra.mxu1 %v3538_v2  ;;  %v2713_v1 = vor.u32 %v3171_v44, %v2712_v42  ;;  %v2700_v2 = vld [vmem:[#allocation4 + $0xc0] sm:$0xf]  ;;  %v2729_v14 = vor.u32 %v3173_v10, %v2726_v12  ;;  %v2876_v10 = vld [vmem:[#allocation4 + $0x218] sm:$0xf]  ;;  %v3211_v12 = vld [vmem:[#allocation4 + $0x220] sm:$0xf0] }
  0xf0   :  { %1664 = vmatpush.bf16.msra.mxu0 %v2785_v11  ;;  %1677 = vmatpush.bf16.msra.mxu1 %v2881_v20  ;;  %v2701_v48 = vor.u32 %v3168_v45, %v2700_v2  ;;  %v2786_v11 = vld [vmem:[#allocation4 + $0x174] sm:$0xf0]  ;;  %v2849_v20 = vor.u32 %v3203_v18, %v2846_v19  ;;  %v2822_v42 = vld [vmem:[#allocation4 + $0x1bc] sm:$0xf0] }
  0xf1   :  { %v2789_v17 = vor.u32 %v3188_v15, %v2786_v11  ;;  %1705 = vmatpush.bf16.msrb.mxu2 %v2669_v13  ;;  %v2630_v2 = vld [vmem:[#allocation4 + $0x3c] sm:$0xf0]  ;;  %v2897_v13 = vor.u32 %v3215_v7, %v2894_v9  ;;  %v3170_v15 = vld [vmem:[#allocation4 + $0xdc] sm:$0xf]  ;;  %v2714_v11 = vld [vmem:[#allocation4 + $0xe4] sm:$0xf0] }
  0xf3   :  { %1716 = vmatpush.bf16.msrb.mxu3 %v2789_v17 }
  0xf4   :  { %1665 = vmatpush.bf16.msra.mxu0 %v2773_v30  ;;  %1678 = vmatpush.bf16.msra.mxu1 %v2869_v52  ;;  %v3200_v30 = vld [vmem:[#allocation4 + $0x1cc] sm:$0xf]  ;;  %v2810_v52 = vld [vmem:[#allocation4 + $0x1a4] sm:$0xf0] }
  0xf5   :  { %v2837_v28 = vor.u32 %v3200_v30, %v2834_v31  ;;  %1706 = vmatpush.bf16.msrb.mxu2 %v2657_v24  ;;  %v2813_v53 = vor.u32 %v3194_v51, %v2810_v52  ;;  %v2900_v24 = vld [vmem:[#allocation4 + $0x248] sm:$0xf]  ;;  %v2672_v51 = vld [vmem:[#allocation4 + $0x80] sm:$0xf] }
  0xf6   :  { %v2901_v26 = vor.u32 %v3217_v25, %v2900_v24  ;;  %v3178_v24 = vld [vmem:[#allocation4 + $0x118] sm:$0xf0] }
  0xf7   :  { %1717 = vmatpush.bf16.msrb.mxu3 %v2777_v32 }
  0xf8   :  { %1666 = vmatpush.bf16.msra.mxu0 %v2761_v33  ;;  %1679 = vmatpush.bf16.msra.mxu1 %v2857_v3  ;;  %v3152_v33 = vld [vmem:[#allocation4 + $0x4c] sm:$0xf]  ;;  %v2801_v3 = vor.u32 %v3191_v61, %v2798_v62 }
  0xfc   :  { %1667 = vmatpush.bf16.msra.mxu0 %v2749_v35  ;;  %1680 = vmatpush.bf16.msra.mxu1 %v2845_v16  ;;  %v2645_v35 = vor.u32 %v3152_v33, %v2642_v34  ;;  %v2717_v16 = vor.u32 %v3170_v15, %v2714_v11  ;;  %v3166_v34 = vld [vmem:[#allocation4 + $0xb8] sm:$0xf0] }
  0xfe   :  { %1707 = vmatpush.bf16.msrb.mxu2 %v2645_v35  ;;  %v3190_v35 = vld [vmem:[#allocation4 + $0x178] sm:$0xf0] }
 0x100   :  { %1668 = vmatpush.bf16.msra.mxu0 %v2737_v38  ;;  %v2762_v38 = vld [vmem:[#allocation4 + $0x144] sm:$0xf0]  ;;  %1681 = vmatpush.bf16.msra.mxu1 %v2833_v29 }
 0x101   :  { %v2765_v40 = vor.u32 %v3182_v37, %v2762_v38  ;;  %v2793_v37 = vor.u32 %v3190_v35, %v2792_v27  ;;  %v3225_v38 = vld [vmem:[%s3767_s9 + $0x38] sm:$0xff]  ;;  %v2636_v35 = vld [vmem:[#allocation4 + $0x38] sm:$0xf] }
 0x103   :  { %1718 = vmatpush.bf16.msrb.mxu3 %v2765_v40 }
 0x104   :  { %1669 = vmatpush.bf16.msra.mxu0 %v2725_v41  ;;  %v3197_v41 = vld [vmem:[#allocation4 + $0x1b4] sm:$0xf]  ;;  %1682 = vmatpush.bf16.msra.mxu1 %v2821_v39  ;;  %v2684_v39 = vld [vmem:[#allocation4 + $0x98] sm:$0xf] }
 0x105   :  { %v2825_v44 = vor.u32 %v3197_v41, %v2822_v42  ;;  %v3163_v42 = vld [vmem:[#allocation4 + $0xa0] sm:$0xf0] }
 0x108   :  { %1670 = vmatpush.bf16.msra.mxu0 %v2713_v1  ;;  %v3149_v1 = vld [vmem:[#allocation4 + $0x34] sm:$0xf] }
 0x109   :  { %v2633_v45 = vor.u32 %v3149_v1, %v2630_v2  ;;  %v3187_v1 = vld [vmem:[#allocation4 + $0x160] sm:$0xf0] }
 0x10b   :  { %1708 = vmatpush.bf16.msrb.mxu2 %v2633_v45  ;;  %v3599_v45 = vld [vmem:[%s3764_s6] sm:$0x7] }
 0x10c   :  { %1671 = vmatpush.bf16.msra.mxu0 %v2701_v48  ;;  %v3179_v48 = vld [vmem:[#allocation4 + $0x124] sm:$0xf]  ;;  %v534_v9 = vperm.slane %v3599_v45, 1 }
 0x10d   :  { %v2753_v23 = vor.u32 %v3179_v48, %v2750_v50  ;;  %v2685_v48 = vor.u32 %v3163_v42, %v2684_v39  ;;  %v3224_v50 = vld [vmem:[%s3767_s9 + $0x30] sm:$0xff] }
 0x10e   :  { %v2732_v39 = vld [vmem:[#allocation4 + $0xf8] sm:$0xf] }
 0x10f   :  { %1719 = vmatpush.bf16.msrb.mxu3 %v2753_v23  ;;  %v3160_v23 = vld [vmem:[#allocation4 + $0x88] sm:$0xf0] }
 0x110   :  { %1729 = vmatpush.bf16.msrb.mxu0 %v2885_v49  ;;  %v2809_v49 = vor.u32 %v3195_v47, %v2808_v46  ;;  %v2673_v57 = vor.u32 %v3160_v23, %v2672_v51  ;;  %v2624_v51 = vld [vmem:[#allocation4 + $0x20] sm:$0xf] }
 0x112   :  { %1683 = vmatpush.bf16.msra.mxu1 %v2809_v49 }
 0x113   :  { %1720 = vmatpush.bf16.msrb.mxu3 %v2741_v63 }
 0x114   :  { %1730 = vmatpush.bf16.msrb.mxu0 %v2873_v43  ;;  %v3146_v43 = vld [vmem:[#allocation4 + $0x1c] sm:$0xf] }
 0x115   :  { %v2621_v55 = vor.u32 %v3146_v43, %v2618_v54  ;;  %v3184_v43 = vld [vmem:[#allocation4 + $0x148] sm:$0xf0]  ;;  %v533_v54 = vperm.slane %v3599_v45, 0 }
 0x116   :  { %1684 = vmatpush.bf16.msra.mxu1 %v2797_v59  ;;  %v3223_v59 = vld [vmem:[%s3767_s9 + $0x28] sm:$0xff] }
 0x117   :  { %1709 = vmatpush.bf16.msrb.mxu2 %v2621_v55  ;;  %1721 = vmatpush.bf16.msrb.mxu3 %v2729_v14  ;;  %v2888_v55 = vld [vmem:[#allocation4 + $0x230] sm:$0xf] }
 0x118   :  { %1731 = vmatpush.bf16.msrb.mxu0 %v2861_v5  ;;  %v3143_v5 = vld [vmem:[#allocation4 + $0x4] sm:$0xf]  ;;  %v2889_v63 = vor.u32 %v3214_v56, %v2888_v55  ;;  %v2840_v55 = vld [vmem:[#allocation4 + $0x1d0] sm:$0xf] }
 0x119   :  { %v2609_v8 = vor.u32 %v3143_v5, %v2606_v6  ;;  %v2756_v5 = vld [vmem:[#allocation4 + $0x128] sm:$0xf]  ;;  %v3181_v6 = vld [vmem:[#allocation4 + $0x130] sm:$0xf0] }
 0x11a   :  { %1749 = vmatpush.bf16.msrb.mxu1 %v2897_v13  ;;  %v2757_v11 = vor.u32 %v3181_v6, %v2756_v5  ;;  %v3169_v5 = vld [vmem:[#allocation4 + $0xd0] sm:$0xf0] }
 0x11b   :  { %1710 = vmatpush.bf16.msrb.mxu2 %v2609_v8  ;;  %1722 = vmatpush.bf16.msrb.mxu3 %v2717_v16  ;;  %v2648_v16 = vld [vmem:[#allocation4 + $0x50] sm:$0xf] }
 0x11c   :  { %1732 = vmatpush.bf16.msrb.mxu0 %v2849_v20  ;;  %v3167_v20 = vld [vmem:[#allocation4 + $0xc4] sm:$0xf] }
 0x11d   :  { %v2705_v22 = vor.u32 %v3167_v20, %v2702_v21  ;;  %v3154_v20 = vld [vmem:[#allocation4 + $0x58] sm:$0xf0] }
 0x11f   :  { %1723 = vmatpush.bf16.msrb.mxu3 %v2705_v22  ;;  %v2744_v22 = vld [vmem:[#allocation4 + $0x110] sm:$0xf] }
 0x120   :  { %1733 = vmatpush.bf16.msrb.mxu0 %v2837_v28  ;;  %v2696_v28 = vld [vmem:[#allocation4 + $0xb0] sm:$0xf]  ;;  %v2745_v27 = vor.u32 %v3178_v24, %v2744_v22  ;;  %v3196_v22 = vld [vmem:[#allocation4 + $0x1a8] sm:$0xf0] }
 0x121   :  { %v2697_v36 = vor.u32 %v3166_v34, %v2696_v28 }
 0x124   :  { %1734 = vmatpush.bf16.msrb.mxu0 %v2825_v44  ;;  %v2780_v44 = vld [vmem:[#allocation4 + $0x158] sm:$0xf] }
 0x125   :  { %v2781_v49 = vor.u32 %v3187_v1, %v2780_v44 }
 0x128   :  { %1735 = vmatpush.bf16.msrb.mxu0 %v2813_v53  ;;  %v2768_v53 = vld [vmem:[#allocation4 + $0x140] sm:$0xf] }
 0x129   :  { %v2769_v58 = vor.u32 %v3184_v43, %v2768_v53  ;;  %v3148_v53 = vld [vmem:[#allocation4 + $0x28] sm:$0xf0]  ;;  %v2720_v43 = vld [vmem:[#allocation4 + $0xe0] sm:$0xf] }
 0x12c   :  { %1736 = vmatpush.bf16.msrb.mxu0 %v2801_v3  ;;  %v3157_v3 = vld [vmem:[#allocation4 + $0x70] sm:$0xf0] }
 0x12d   :  { %v2661_v15 = vor.u32 %v3157_v3, %v2660_v60  ;;  %v2612_v60 = vld [vmem:[#allocation4 + $0x8] sm:$0xf] }
 0x12e   :  { %v2708_v3 = vld [vmem:[#allocation4 + $0xc8] sm:$0xf] }
 0x137   :  { %v3568_v17 = vpop.permute.xlu1 %1235 }
 0x138   :  { %v3570_v18 = vpop.f32.mrf.mxu2  ;;  %v3572_v19 = vpop.f32.mrf.mxu3 }
 0x139   :  { %v966_v7 = vadd.f32 %v3570_v18, %v533_v54  ;;  %v2877_v18 = vor.u32 %v3211_v12, %v2876_v10  ;;  %v3199_v10 = vld [vmem:[#allocation4 + $0x1c0] sm:$0xf0] }
 0x13b   :  { %v979_v25 = vadd.f32 %v3572_v19, %v966_v7  ;;  %v3221_v19 = vld [vmem:[%s3767_s9 + $0x18] sm:$0xff]  ;;  %v535_v7 = vperm.slane %v3599_v45, 2 }
 0x13f   :  { %v1238_v0 = vpop.permute.xlu1 %1237 }
 0x140   :  { %v3576_v29 = vsel %vm1241_vm4, %v3568_v17, %v1238_v0  ;;  %v967_v4 = vpop.f32.mrf.mxu2  ;;  %v980_v30 = vpop.f32.mrf.mxu3 }
 0x141   :  { %1672 = vmatmul.bf16.vlgmr.msra.gmra.mxu0 %v3576_v29  ;;  %v3208_v4 = vld [vmem:[#allocation4 + $0x208] sm:$0xf0]  ;;  %v2649_v30 = vor.u32 %v3154_v20, %v2648_v16 }
 0x142   :  { %1801 = vmatpush.bf16.msra.mxu0 %v2901_v26  ;;  %v3218_v20 = vld [vmem:[%s3767_s9] sm:$0xff] }
 0x148   :  { %v3579_v31 = vpop.f32.mrf.mxu2 }
 0x14b   :  { %v3581_v32 = vpop.f32.mrf.mxu0 }
 0x14c   :  { %v3583_v33 = vpop.f32.mrf.mxu1  ;;  %v992_v28 = vadd.f32 %v3581_v32, %v979_v25  ;;  %v3205_v32 = vld [vmem:[#allocation4 + $0x1f0] sm:$0xf0] }
 0x150   :  { %v1032_v40 = vpop.f32.mrf.mxu2  ;;  %v3588_v41 = vpop.permute.xlu0 %1239 }
 0x151   :  { %2902 = vmatmul.msk.bf16.vlgmr.msra.gmra.mxu2 %vm952_vm3, %v3588_v41  ;;  %v3594_v2 = vsel %vm1241_vm4, %v1238_v0, %v3588_v41  ;;  %v2864_v0 = vld [vmem:[#allocation4 + $0x200] sm:$0xf]  ;;  %v3175_v40 = vld [vmem:[#allocation4 + $0x100] sm:$0xf0] }
 0x152   :  { %v3601_v46 = vpop.f32.mrf.mxu3  ;;  %1685 = vmatmul.bf16.vlgmr.msra.gmra.mxu1 %v3594_v2  ;;  %1737 = vmatmul.bf16.vlgmr.msrb.gmra.mxu0 %v3594_v2 }
 0x153   :  { %1755 = vmatpush.bf16.msra.mxu1 %v2697_v36  ;;  %1768 = vmatpush.bf16.msra.mxu2 %v2793_v37  ;;  %v993_v47 = vpop.f32.mrf.mxu0  ;;  %v3151_v36 = vld [vmem:[#allocation4 + $0x40] sm:$0xf0] }
 0x154   :  { %v1006_v52 = vpop.f32.mrf.mxu1  ;;  %2156 = vmatpush.bf16.msrb.mxu0 %v3225_v38  ;;  %v2865_v38 = vor.u32 %v3208_v4, %v2864_v0  ;;  %v2637_v1 = vor.u32 %v3151_v36, %v2636_v35  ;;  %v1005_v47 = vadd.f32 %v3583_v33, %v992_v28  ;;  %v3202_v33 = vld [vmem:[#allocation4 + $0x1d8] sm:$0xf0]  ;;  %v3193_v28 = vld [vmem:[#allocation4 + $0x190] sm:$0xf0] }
 0x155   :  { %v3232_v4 = vld [vmem:[%s3767_s9 + $0x70] sm:$0xff] }
 0x156   :  { %v1112_v56 = vmax.f32 %v1005_v47, 0.0 }
 0x157   :  { %1756 = vmatpush.bf16.msra.mxu1 %v2685_v48  ;;  %1769 = vmatpush.bf16.msra.mxu2 %v2781_v49 }
 0x158   :  { %v3612_v61 = vpop.f32.mrf.mxu2  ;;  %2157 = vmatpush.bf16.msrb.mxu0 %v3224_v50  ;;  %v1234_v62 = vpop.permute.xlu0 %1233  ;;  %v3220_v50 = vld [vmem:[%s3767_s9 + $0x10] sm:$0xff] }
 0x159   :  { %v3617_v8 = vsel %vm1241_vm4, %v1234_v62, %v3568_v17  ;;  %v3222_v17 = vld [vmem:[%s3767_s9 + $0x20] sm:$0xff]  ;;  %v2841_v62 = vor.u32 %v3202_v33, %v2840_v55 }
 0x15a   :  { %v1045_v13 = vpop.f32.mrf.mxu3  ;;  %1659 = vmatmul.bf16.vlgmr.msra.gmra.mxu3 %v3617_v8 }
 0x15b   :  { %1757 = vmatpush.bf16.msra.mxu1 %v2673_v57  ;;  %1770 = vmatpush.bf16.msra.mxu2 %v2769_v58  ;;  %v1056_v14 = vpop.f32.mrf.mxu0  ;;  %v2625_v57 = vor.u32 %v3148_v53, %v2624_v51 }
 0x15c   :  { %v1017_v21 = vpop.f32.mrf.mxu1  ;;  %1781 = vmatpush.bf16.msra.mxu3 %v2889_v63  ;;  %2158 = vmatpush.bf16.msrb.mxu0 %v3223_v59  ;;  %v3219_v59 = vld [vmem:[%s3767_s9 + $0x8] sm:$0xff] }
 0x15d   :  { %v1018_v26 = vadd.f32 %v1017_v21, %v534_v9  ;;  %v3145_v63 = vld [vmem:[#allocation4 + $0x10] sm:$0xf0]  ;;  %v2828_v9 = vld [vmem:[#allocation4 + $0x1b8] sm:$0xf] }
 0x15e   :  { %v2613_v13 = vor.u32 %v3145_v63, %v2612_v60  ;;  %v2829_v16 = vor.u32 %v3199_v10, %v2828_v9 }
 0x15f   :  { %v1031_v34 = vadd.f32 %v3579_v31, %v1018_v26  ;;  %1758 = vmatpush.bf16.msra.mxu1 %v2661_v15  ;;  %1771 = vmatpush.bf16.msra.mxu2 %v2757_v11  ;;  %v2852_v31 = vld [vmem:[#allocation4 + $0x1e8] sm:$0xf] }
 0x160   :  { %v1097_v37 = vpop.f32.mrf.mxu2  ;;  %1782 = vmatpush.bf16.msra.mxu3 %v2877_v18  ;;  %2159 = vmatpush.bf16.msrb.mxu0 %v3222_v17  ;;  %v2853_v23 = vor.u32 %v3205_v32, %v2852_v31  ;;  %v3233_v18 = vld [vmem:[%s3767_s9 + $0x78] sm:$0xff] }
 0x161   :  { %v1044_v42 = vadd.f32 %v3601_v46, %v1031_v34  ;;  %1711 = vmatmul.bf16.vlgmr.msrb.gmra.mxu2 %v3617_v8  ;;  %v2733_v46 = vor.u32 %v3175_v40, %v2732_v39  ;;  %v2816_v17 = vld [vmem:[#allocation4 + $0x1a0] sm:$0xf]  ;;  %v3228_v37 = vld [vmem:[%s3767_s9 + $0x50] sm:$0xff] }
 0x162   :  { %v3632_v44 = vpop.f32.mrf.mxu3  ;;  %2903 = vmatmul.msk.bf16.vlgmr.msrb.gmra.mxu1 %vm952_vm3, %v3588_v41  ;;  %2904 = vmatmul.msk.bf16.vlgmr.msra.gmra.mxu0 %vm952_vm3, %v3588_v41  ;;  %v3172_v41 = vld [vmem:[#allocation4 + $0xe8] sm:$0xf0]  ;;  %v2817_v25 = vor.u32 %v3196_v22, %v2816_v17 }
 0x163   :  { %v1057_v48 = vadd.f32 %v1056_v14, %v1044_v42  ;;  %1759 = vmatpush.bf16.msra.mxu1 %v2649_v30  ;;  %1772 = vmatpush.bf16.msra.mxu2 %v2745_v27  ;;  %v1058_v49 = vpop.f32.mrf.mxu0  ;;  %v2721_v58 = vor.u32 %v3172_v41, %v2720_v43  ;;  %v2709_v14 = vor.u32 %v3169_v5, %v2708_v3  ;;  %v2804_v30 = vld [vmem:[#allocation4 + $0x188] sm:$0xf] }
 0x164   :  { %v1019_v52 = vpop.f32.mrf.mxu1  ;;  %1783 = vmatpush.bf16.msra.mxu3 %v2865_v38  ;;  %2160 = vmatpush.bf16.msrb.mxu0 %v3221_v19  ;;  %v2805_v36 = vor.u32 %v3193_v28, %v2804_v30  ;;  %v3227_v38 = vld [vmem:[%s3767_s9 + $0x48] sm:$0xff]  ;;  %v1217_v49 = vld [vmem:[%s3766_s8] sm:$0x7] }
 0x165   :  { %v1113_v54 = vmax.f32 %v1057_v48, 0.0  ;;  %v1219_v52 = vperm.slane %v1217_v49, 0  ;;  %v1220_v33 = vperm.slane %v1217_v49, 1 }
 0x167   :  { %1760 = vmatpush.bf16.msra.mxu1 %v2637_v1  ;;  %1773 = vmatpush.bf16.msra.mxu2 %v2733_v46  ;;  %v1115_v6 = vpack.c.bf16 %v1113_v54, %v1112_v56 }
 0x168   :  { %1784 = vmatpush.bf16.msra.mxu3 %v2853_v23  ;;  %2161 = vmatpush.bf16.msrb.mxu0 %v3220_v50 }
 0x169   :  { %v1814_v21 = vunpack.c.l.b16 %v1115_v6  ;;  %v1815_v19 = vunpack.c.h.b16 %v1115_v6 }
 0x16a   :  { %v1110_v12 = vpop.f32.mrf.mxu3  ;;  %1724 = vmatmul.bf16.vlgmr.msrb.gmra.mxu3 %v3576_v29 }
 0x16b   :  { %1761 = vmatpush.bf16.msra.mxu1 %v2625_v57  ;;  %1774 = vmatpush.bf16.msra.mxu2 %v2721_v58  ;;  %v1817_v26 = vpack.c.b16 %v1814_v21, %v1814_v21  ;;  %v1818_v39 = vpack.c.b16 %v1815_v19, %v1815_v19 }
 0x16c   :  { %v1069_v15 = vpop.f32.mrf.mxu0  ;;  %v1082_v11 = vpop.f32.mrf.mxu1  ;;  %1785 = vmatpush.bf16.msra.mxu3 %v2841_v62  ;;  %2162 = vmatpush.bf16.msrb.mxu0 %v3219_v59 }
 0x16d   :  { %v1070_v45 = vadd.f32 %v1069_v15, %v535_v7  ;;  %v3249_v15 = vld [vmem:[%s3767_s9 + $0xf8] sm:$0xff] }
 0x16f   :  { %v1083_v24 = vadd.f32 %v1082_v11, %v1070_v45  ;;  %1762 = vmatpush.bf16.msra.mxu1 %v2613_v13  ;;  %1775 = vmatpush.bf16.msra.mxu2 %v2709_v14  ;;  %v3241_v13 = vld [vmem:[%s3767_s9 + $0xb8] sm:$0xff]  ;;  %v1221_v11 = vperm.slane %v1217_v49, 2 }
 0x170   :  { %1786 = vmatpush.bf16.msra.mxu3 %v2829_v16  ;;  %2163 = vmatpush.bf16.msrb.mxu0 %v3218_v20  ;;  %v3240_v20 = vld [vmem:[%s3767_s9 + $0xb0] sm:$0xff] }
 0x171   :  { %v1096_v0 = vadd.f32 %v3612_v61, %v1083_v24  ;;  %v3231_v61 = vld [vmem:[%s3767_s9 + $0x68] sm:$0xff] }
 0x172   :  { %1776 = vmatmul.bf16.vlgmr.msra.gmra.mxu2 %v3576_v29  ;;  %1763 = vmatmul.bf16.vlgmr.msra.gmra.mxu1 %v3617_v8  ;;  %v3230_v29 = vld [vmem:[%s3767_s9 + $0x60] sm:$0xff]  ;;  %v3229_v8 = vld [vmem:[%s3767_s9 + $0x58] sm:$0xff]  ;;  %v3239_v24 = vld [vmem:[%s3767_s9 + $0xa8] sm:$0xff] }
 0x173   :  { %2169 = vmatpush.bf16.msrb.mxu1 %v3233_v18  ;;  %v3660_v34 = vadd.f32 %v3632_v44, %v1096_v0  ;;  %2164 = vmatmul.bf16.vlgmr.msrb.gmra.mxu0 %v1817_v26  ;;  %v3248_v18 = vld [vmem:[%s3767_s9 + $0xf0] sm:$0xff] }
 0x174   :  { %v1071_v27 = vpop.f32.mrf.mxu0  ;;  %v1084_v35 = vpop.f32.mrf.mxu1  ;;  %1787 = vmatpush.bf16.msra.mxu3 %v2817_v25  ;;  %2182 = vmatpush.bf16.msrb.mxu2 %v3241_v13  ;;  %v3247_v25 = vld [vmem:[%s3767_s9 + $0xe8] sm:$0xff] }
 0x175   :  { %v3238_v27 = vld [vmem:[%s3767_s9 + $0xa0] sm:$0xff] }
 0x176   :  { %v3246_v35 = vld [vmem:[%s3767_s9 + $0xe0] sm:$0xff] }
 0x177   :  { %2170 = vmatpush.bf16.msrb.mxu1 %v3232_v4 }
 0x178   :  { %1788 = vmatpush.bf16.msra.mxu3 %v2805_v36  ;;  %2183 = vmatpush.bf16.msrb.mxu2 %v3240_v20 }
 0x17b   :  { %2171 = vmatpush.bf16.msrb.mxu1 %v3231_v61  ;;  %1789 = vmatmul.bf16.vlgmr.msra.gmra.mxu3 %v3594_v2  ;;  %v3226_v2 = vld [vmem:[%s3767_s9 + $0x40] sm:$0xff] }
 0x17c   :  { %2195 = vmatpush.bf16.msrb.mxu3 %v3249_v15  ;;  %2184 = vmatpush.bf16.msrb.mxu2 %v3239_v24 }
 0x17f   :  { %2172 = vmatpush.bf16.msrb.mxu1 %v3230_v29 }
 0x180   :  { %2196 = vmatpush.bf16.msrb.mxu3 %v3248_v18  ;;  %2185 = vmatpush.bf16.msrb.mxu2 %v3238_v27 }
 0x183   :  { %2173 = vmatpush.bf16.msrb.mxu1 %v3229_v8  ;;  %v3237_v8 = vld [vmem:[%s3767_s9 + $0x98] sm:$0xff] }
 0x184   :  { %2197 = vmatpush.bf16.msrb.mxu3 %v3247_v25  ;;  %2186 = vmatpush.bf16.msrb.mxu2 %v3237_v8 }
 0x187   :  { %2174 = vmatpush.bf16.msrb.mxu1 %v3228_v37  ;;  %v3245_v37 = vld [vmem:[%s3767_s9 + $0xd8] sm:$0xff] }
 0x188   :  { %2198 = vmatpush.bf16.msrb.mxu3 %v3246_v35 }
 0x18b   :  { %2175 = vmatpush.bf16.msrb.mxu1 %v3227_v38 }
 0x18c   :  { %2199 = vmatpush.bf16.msrb.mxu3 %v3245_v37 }
 0x18f   :  { %2176 = vmatpush.bf16.msrb.mxu1 %v3226_v2 }
 0x192   :  { %2177 = vmatmul.bf16.vlgmr.msrb.gmra.mxu1 %v1818_v39  ;;  %v3236_v39 = vld [vmem:[%s3767_s9 + $0x90] sm:$0xff] }
 0x193   :  { %2187 = vmatpush.bf16.msrb.mxu2 %v3236_v39 }
 0x1be   :  { %v1673_v40 = vpop.f32.mrf.mxu0 }
 0x1c6   :  { %v1675_v42 = vpop.f32.mrf.mxu0 }
 0x1c7   :  { %v3244_v42 = vld [vmem:[%s3767_s9 + $0xd0] sm:$0xff] }
 0x1c8   :  { %2200 = vmatpush.bf16.msrb.mxu3 %v3244_v42 }
 0x1cf   :  { %v1686_v31 = vpop.f32.mrf.mxu1  ;;  %v1738_v32 = vpop.f32.mrf.mxu0 }
 0x1d4   :  { %v1699_v44 = vpop.f32.mrf.mxu2 }
 0x1d7   :  { %v1688_v1 = vpop.f32.mrf.mxu1  ;;  %v1740_v47 = vpop.f32.mrf.mxu0 }
 0x1dc   :  { %v1701_v48 = vpop.f32.mrf.mxu2 }
 0x1dd   :  { %v1660_v46 = vpop.f32.mrf.mxu3  ;;  %v3234_v48 = vld [vmem:[%s3767_s9 + $0x80] sm:$0xff] }
 0x1de   :  { %v1661_v23 = vadd.f32 %v1660_v46, %v1219_v52  ;;  %v3243_v46 = vld [vmem:[%s3767_s9 + $0xc8] sm:$0xff] }
 0x1df   :  { %v1751_v50 = vpop.f32.mrf.mxu1  ;;  %v1803_v51 = vpop.f32.mrf.mxu0  ;;  %2201 = vmatpush.bf16.msrb.mxu3 %v3243_v46 }
 0x1e0   :  { %v1674_v55 = vadd.f32 %v1673_v40, %v1661_v23  ;;  %v3261_v40 = vld [vmem:[%s3768_s10] ss:$0 sm:$0xff] }
 0x1e2   :  { %v1687_v56 = vadd.f32 %v1686_v31, %v1674_v55 }
 0x1e4   :  { %v1712_v53 = vpop.f32.mrf.mxu2  ;;  %v1700_v5 = vadd.f32 %v1699_v44, %v1687_v56 }
 0x1e5   :  { %v1662_v43 = vpop.f32.mrf.mxu3  ;;  %v1713_v57 = vadd.f32 %v1712_v53, %v1220_v33  ;;  %v3252_v33 = vld [vmem:[%s3767_s9 + $0x110] sm:$0xff] }
 0x1e6   :  { %v1807_v9 = vmax.f32 %v1700_v5, 0.0  ;;  %v3254_v43 = vld [vmem:[%s3767_s9 + $0x120] sm:$0xff] }
 0x1e7   :  { %v1753_v41 = vpop.f32.mrf.mxu1  ;;  %v1805_v54 = vpop.f32.mrf.mxu0 }
 0x1e8   :  { %v1114_v41 = vmax.f32 %v3660_v34, 0.0  ;;  %v3253_v54 = vld [vmem:[%s3767_s9 + $0x118] sm:$0xff] }
 0x1ea   :  { %v1116_v55 = vpack.c.bf16 %v1114_v41, %v1114_v41 }
 0x1ec   :  { %v1714_v58 = vpop.f32.mrf.mxu2  ;;  %v1816_v56 = vunpack.c.l.b16 %v1116_v55 }
 0x1ed   :  { %v1725_v59 = vpop.f32.mrf.mxu3 }
 0x1ee   :  { %v1726_v60 = vadd.f32 %v1725_v59, %v1713_v57  ;;  %v3251_v57 = vld [vmem:[%s3767_s9 + $0x108] sm:$0xff]  ;;  %v1819_v58 = vpack.c.b16 %v1816_v56, %v1816_v56  ;;  %v3250_v59 = vld [vmem:[%s3767_s9 + $0x100] sm:$0xff] }
 0x1ef   :  { %v1764_v62 = vpop.f32.mrf.mxu1 }
 0x1f0   :  { %v1739_v63 = vadd.f32 %v1738_v32, %v1726_v60  ;;  %v2165_v3 = vpop.f32.mrf.mxu0  ;;  %v1765_v22 = vadd.f32 %v1764_v62, %v1221_v11  ;;  %v3235_v32 = vld [vmem:[%s3767_s9 + $0x88] sm:$0xff] }
 0x1f1   :  { %v2166_v44 = vadd.f32 %v3261_v40, %v2165_v3  ;;  %2188 = vmatpush.bf16.msrb.mxu2 %v3235_v32 }
 0x1f2   :  { %v1752_v6 = vadd.f32 %v1751_v50, %v1739_v63  ;;  %v3242_v50 = vld [vmem:[%s3767_s9 + $0xc0] sm:$0xff] }
 0x1f3   :  { %2202 = vmatpush.bf16.msrb.mxu3 %v3242_v50 }
 0x1f4   :  { %v1808_v7 = vmax.f32 %v1752_v6, 0.0 }
 0x1f5   :  { %v1777_v10 = vpop.f32.mrf.mxu2  ;;  %v1727_v12 = vpop.f32.mrf.mxu3  ;;  %2189 = vmatpush.bf16.msrb.mxu2 %v3234_v48 }
 0x1f6   :  { %v1810_v14 = vpack.c.bf16 %v1808_v7, %v1807_v9  ;;  %v1778_v26 = vadd.f32 %v1777_v10, %v1765_v22 }
 0x1f7   :  { %v1766_v16 = vpop.f32.mrf.mxu1 }
 0x1f8   :  { %v2167_v21 = vpop.f32.mrf.mxu0  ;;  %v1824_v45 = vunpack.c.l.b16 %v1810_v14  ;;  %v1825_v30 = vunpack.c.h.b16 %v1810_v14 }
 0x1fa   :  { %v1827_v17 = vpack.c.b16 %v1824_v45, %v1824_v45  ;;  %v1828_v61 = vpack.c.b16 %v1825_v30, %v1825_v30 }
 0x1fc   :  { %1830 = vrot.lane.b32.xlu2 %v1827_v17, %s3319_s22 }
 0x1fd   :  { %v1779_v0 = vpop.f32.mrf.mxu2 }
 0x1fe   :  { %v1790_v4 = vpop.f32.mrf.mxu3 }
 0x1ff   :  { %v1791_v28 = vadd.f32 %v1790_v4, %v1778_v26 }
 0x201   :  { %v1804_v36 = vadd.f32 %v1803_v51, %v1791_v28  ;;  %v1919_v51 = vld [vmem:[%s3767_s9 + $0x128] sm:$0xf] }
 0x202   :  { %v2073_v52 = vunpack.c.l.b16 %v1919_v51 }
 0x203   :  { %v1809_v29 = vmax.f32 %v1804_v36, 0.0 }
 0x204   :  { %1832 = vrot.lane.b32.xlu2 %v1828_v61, %s3319_s22  ;;  %v2111_v23 = vpack.c.b16 %v2073_v52, %v2073_v52 }
 0x205   :  { %v1811_v38 = vpack.c.bf16 %v1809_v29, %v1809_v29 }
 0x206   :  { %v1792_v2 = vpop.f32.mrf.mxu3  ;;  %v2154_v53 = vsel %vm117_vm0, %v2111_v23, 0 }
 0x207   :  { %v1826_v19 = vunpack.c.l.b16 %v1811_v38  ;;  %2210 = vmatpush.bf16.msra.mxu0 %v2154_v53 }
 0x209   :  { %v1829_v31 = vpack.c.b16 %v1826_v19, %v1826_v19 }
 0x20b   :  { %1834 = vrot.lane.b32.xlu0 %v1829_v31, %s3319_s22  ;;  %2211 = vmatpush.bf16.msra.mxu0 %v3254_v43 }
 0x20f   :  { %v2178_v1 = vpop.f32.mrf.mxu1  ;;  %2212 = vmatpush.bf16.msra.mxu0 %v3253_v54 }
 0x210   :  { %v2179_v47 = vadd.f32 %v2178_v1, %v2166_v44 }
 0x213   :  { %2213 = vmatpush.bf16.msra.mxu0 %v3252_v33 }
 0x217   :  { %v2180_v49 = vpop.f32.mrf.mxu1  ;;  %2214 = vmatpush.bf16.msra.mxu0 %v3251_v57 }
 0x21b   :  { %2215 = vmatpush.bf16.msra.mxu0 %v3250_v59 }
 0x256   :  { %v1831_v34 = vpop.permute.xlu2 %1830 }
 0x257   :  { %v1843_v60 = vsel %vm1836_vm5, %v1819_v58, %v1831_v34 }
 0x258   :  { %2190 = vmatmul.bf16.vlgmr.msrb.gmra.mxu2 %v1843_v60 }
 0x25e   :  { %v1833_v62 = vpop.permute.xlu2 %1832 }
 0x25f   :  { %v1837_v63 = vsel %vm1836_vm5, %v1831_v34, %v1833_v62 }
 0x260   :  { %2203 = vmatmul.bf16.vlgmr.msrb.gmra.mxu3 %v1837_v63 }
 0x27d   :  { %v1835_v3 = vpop.permute.xlu0 %1834 }
 0x27e   :  { %v1838_v5 = vsel %vm1836_vm5, %v1833_v62, %v1835_v3 }
 0x27f   :  { %3053 = vmatmul.msk.bf16.vlgmr.msra.gmra.mxu0 %vm2149_vm6, %v1838_v5 }
 0x2db   :  { %v2191_v6 = vpop.f32.mrf.mxu2 }
 0x2dc   :  { %v2192_v12 = vadd.f32 %v2191_v6, %v2179_v47 }
 0x2e3   :  { %v2193_v7 = vpop.f32.mrf.mxu2  ;;  %v2204_v9 = vpop.f32.mrf.mxu3 }
 0x2e4   :  { %v2205_v13 = vadd.f32 %v2204_v9, %v2192_v12 }
 0x2eb   :  { %v2206_v10 = vpop.f32.mrf.mxu3 }
 0x2fc   :  { %v2217_v14 = vpop.f32.mrf.mxu0 }
 0x2fd   :  { %v2218_v15 = vadd.f32 %v2217_v14, %v2205_v13 }
 0x2ff   :  { %2222 = vst.msk [vmem:[%s3769_s11] sm:$0xff] %vm2221_vm7, %v2218_v15 }
 0x304   :  { %v2219_v11 = vpop.f32.mrf.mxu0 }
 0x305   :  { %2227 = vsyncpa [#allocation3], 1 }
 0x306   :  { %2228 = vsyncpa [#allocation5], 1 }

</bundles_post_ra>
